<compile_context>
chip_gen: v7x
topology: tpu7x:2x2x1
jax: 0.10.0
libtpu: 0.0.40
codegen_flags: <defaults>
</compile_context>

<pallas_src>
import jax
import jax.numpy as jnp
import numpy as np
from jax import lax
from jax.experimental import pallas as pl
from jax.experimental.pallas import tpu as pltpu


# ----------------------------------------------------------------------------
# Fused kernel: QKV + stacked-head attention + permutation-folded fc +
#               residual/LN1 + l1 + residual/LN2    (Bs samples per grid step)
# ----------------------------------------------------------------------------
def encoder_layer_kernel(x_ref, wq_ref, wk_ref, wv_ref, hm_ref, bias_ref,
                         eqs_ref, wbd_ref, g1_ref, b1_ref, wl1_ref, bl1_ref,
                         g2_ref, b2_ref, out_ref):
    BsN, D = x_ref.shape              # all samples of this step, flattened rows
    n_heads = hm_ref.shape[0]
    g = eqs_ref.shape[0]              # = D // N  (permutation phases)
    Bs = wbd_ref.shape[2] // D        # samples in this grid step
    N = BsN // Bs                     # sequence length per sample
    d_k = D // n_heads
    eps = jnp.float32(1e-5)
    scale = jnp.float32(1.0 / np.sqrt(d_k))

    x = x_ref[...]                                                    # (BsN, D)

    # --- Q/K/V projections, batched over all samples (lane-0 aligned) --------
    q = jnp.dot(x, wq_ref[...], preferred_element_type=jnp.float32)
    k = jnp.dot(x, wk_ref[...], preferred_element_type=jnp.float32)
    v = jnp.dot(x, wv_ref[...], preferred_element_type=jnp.float32)

    # --- stacked-head attention: 2 matmuls for ALL heads and samples ---------
    # Rows of q_stacked are ordered (head, sample, query).  Masking q to one
    # head's feature lanes makes q_h @ k.T contract only that head's features
    # (the zeros are exact), so k/v need no mask.
    hm = hm_ref[...]                                                  # (H, D)
    q_stacked = jnp.concatenate(
        [q * hm[h:h + 1, :] for h in range(n_heads)], axis=0)        # (H*BsN, D)

    s = lax.dot_general(q_stacked, k, (((1,), (1,)), ((), ())),
                        preferred_element_type=jnp.float32) * scale  # (H*BsN, BsN)
    # precomputed additive bias: -1e30 on cross-sample (query, key) pairs, so
    # the softmax over BsN key lanes is exactly the per-sample softmax over N.
    s = s + bias_ref[...]
    m = jnp.max(s, axis=-1, keepdims=True)
    e = jnp.exp(s - m)
    den = jnp.sum(e, axis=-1, keepdims=True)
    r = pl.reciprocal(den, approx=True)          # EUP slot (cheap)
    r = r * (2.0 - den * r)                      # one Newton step -> ~f32 exact
    p = e * r                                                          # (H*BsN, BsN)

    ctx_stk = jnp.dot(p, v, preferred_element_type=jnp.float32)       # (H*BsN, D)
    # head h's true context sits in head-h lanes of its row block; combine with
    # aligned sublane slices + VPU mul/add (no slicing of partial lane widths).
    ctx = jnp.zeros((BsN, D), jnp.float32)
    for h in range(n_heads):
        ctx = ctx + ctx_stk[h * BsN:(h + 1) * BsN, :] * hm[h:h + 1, :]

    # --- fc with PyTorch's row-mixing permutation folded in (no transposes) --
    #   attn_out[b, r, c] = sum_{q,n} ctx[b, n, r*g+q] * wfc[q*N+n, c]
    # stage 1: A_q = ctx @ Eq           (one-hot gather: column r*g+q -> lane r)
    # stage 2: dim-0 (trans-A) contraction of A_q with a per-sample
    #          block-diagonal copy of wfc[q*N:(q+1)*N, :]  -> (N, Bs*D)
    out_wide = jnp.zeros((N, Bs * D), jnp.float32)
    for qb in range(g):
        a_q = jnp.dot(ctx, eqs_ref[qb],
                      preferred_element_type=jnp.float32)             # (BsN, N)
        out_wide = out_wide + lax.dot_general(
            a_q, wbd_ref[qb], (((0,), (0,)), ((), ())),
            preferred_element_type=jnp.float32)                       # (N, Bs*D)
    attn_out = jnp.concatenate(
        [out_wide[:, b * D:(b + 1) * D] for b in range(Bs)], axis=0)  # (BsN, D)

    # --- residual + LayerNorm1 + Linear(l1) + residual + LayerNorm2 ----------
    # (biased variance, eps=1e-5, matching torch.nn.LayerNorm)
    y1 = attn_out + x
    mu1 = jnp.mean(y1, axis=-1, keepdims=True)
    var1 = jnp.mean((y1 - mu1) ** 2, axis=-1, keepdims=True)
    x1 = (y1 - mu1) * lax.rsqrt(var1 + eps) * g1_ref[...] + b1_ref[...]

    y2 = jnp.dot(x1, wl1_ref[...], preferred_element_type=jnp.float32) \
        + bl1_ref[...] + x1
    mu2 = jnp.mean(y2, axis=-1, keepdims=True)
    var2 = jnp.mean((y2 - mu2) ** 2, axis=-1, keepdims=True)
    out_ref[...] = (y2 - mu2) * lax.rsqrt(var2 + eps) * g2_ref[...] + b2_ref[...]


# ----------------------------------------------------------------------------
# Wrapper: grid collapsed to 1 step (v5e/v6e) or 2 "parallel" steps (v7x)
# ----------------------------------------------------------------------------
def _grid_steps_for_device(B):
    """One step on single-TC chips (v5e/v6e); two parallel steps on v7x."""
    try:
        kind = jax.devices()[0].device_kind.lower()
    except Exception:
        kind = ""
    if "7" in kind and B % 2 == 0 and B >= 2:
        return 2
    return 1


def encoder_layer_forward(X, params, n_heads, n_steps=None):
    """X: (B, N, D) -- B independent (N, D) inputs, EncoderLayer applied to each."""
    B, N, D = X.shape
    assert D % n_heads == 0
    assert D % N == 0          # required by the permutation fold (32 % 8 == 0)
    d_k = D // n_heads
    g = D // N
    if n_steps is None:
        n_steps = _grid_steps_for_device(B)
    assert B % n_steps == 0
    Bs = B // n_steps
    BsN = Bs * N
    f32 = jnp.float32

    # ---- hoisted, host-side constants (resident in VMEM; constant index_maps)
    # per-head feature-lane masks
    hm = (jnp.arange(D)[None, :] // d_k
          == jnp.arange(n_heads)[:, None]).astype(f32)                 # (H, D)
    # additive attention bias: -1e30 on cross-sample (query, key) pairs
    samp = jnp.repeat(jnp.arange(Bs), N)
    blk = jnp.where(samp[:, None] == samp[None, :], 0.0, -1e30).astype(f32)
    bias = jnp.tile(blk, (n_heads, 1))                                 # (H*BsN, BsN)
    # one-hot gathers for the row-mixing permutation: eqs[q, m, r] = [m == r*g+q]
    m_i = jnp.arange(D)[None, :, None]
    r_i = jnp.arange(N)[None, None, :]
    q_i = jnp.arange(g)[:, None, None]
    eqs = (m_i == r_i * g + q_i).astype(f32)                           # (g, D, N)
    # per-sample block-diagonal fc weight: wbd[q, b*N+j, b*D+c] = wfc[q*N+j, c]
    wfc3 = params["wfc_t"].reshape(g, N, D)
    wbd = jnp.einsum("bB,qjc->qbjBc", jnp.eye(Bs, dtype=f32), wfc3)
    wbd = wbd.reshape(g, BsN, Bs * D)

    # NOTE: no D-padding to 128 or bf16 casts -- at this size the kernel is
    # step-overhead / instruction bound, not MXU- or HBM-bound.
    x_spec = pl.BlockSpec((BsN, D), lambda s: (s, 0))
    res2 = lambda shape: pl.BlockSpec(shape, lambda s: (0, 0))
    res3 = lambda shape: pl.BlockSpec(shape, lambda s: (0, 0, 0))

    out = pl.pallas_call(
        encoder_layer_kernel,
        out_shape=jax.ShapeDtypeStruct((B * N, D), f32),
        grid=(n_steps,),
        in_specs=[
            x_spec,                                     # X, flattened to (B*N, D)
            res2((D, D)), res2((D, D)), res2((D, D)),   # W_Q, W_K, W_V
            res2((n_heads, D)),                         # head lane masks
            res2((n_heads * BsN, BsN)),                 # cross-sample softmax bias
            res3((g, D, N)),                            # permutation one-hot gathers
            res3((g, BsN, Bs * D)),                     # block-diagonal fc weight
            res2((1, D)), res2((1, D)),                 # LayerNorm1 gamma / beta
            res2((D, D)), res2((1, D)),                 # l1 weight / bias
            res2((1, D)), res2((1, D)),                 # LayerNorm2 gamma / beta
        ],
        out_specs=x_spec,
        compiler_params=pltpu.CompilerParams(
            dimension_semantics=("parallel",)),         # megacore sharding on v7x
    )(X.reshape(B * N, D), params["wq_t"], params["wk_t"], params["wv_t"],
      hm, bias, eqs, wbd, params["g1"], params["b1"],
      params["wl1_t"], params["bl1"], params["g2"], params["b2"])
    return out.reshape(B, N, D)


# ----------------------------------------------------------------------------
# Pure-JAX reference (mirrors the PyTorch forward exactly, per sample)
# ----------------------------------------------------------------------------
def encoder_layer_reference(X, params, n_heads):
    N, D = X.shape
    d_k = D // n_heads
    eps = 1e-5

    def ln(y, g, b):
        mu = jnp.mean(y, axis=-1, keepdims=True)
        var = jnp.mean((y - mu) ** 2, axis=-1, keepdims=True)
        return (y - mu) / jnp.sqrt(var + eps) * g + b

    Q = (X @ params["wq_t"]).reshape(N, n_heads, d_k).transpose(1, 0, 2)
    K = (X @ params["wk_t"]).reshape(N, n_heads, d_k).transpose(1, 0, 2)
    V = (X @ params["wv_t"]).reshape(N, n_heads, d_k).transpose(1, 0, 2)
    scores = jnp.einsum("hqd,hkd->hqk", Q, K) / np.sqrt(d_k)
    attn = jax.nn.softmax(scores, axis=-1)
    context = jnp.einsum("hqk,hkd->hqd", attn, V)
    context = context.transpose(0, 2, 1).reshape(N, n_heads * d_k)   # row-mixing
    attn_out = context @ params["wfc_t"]
    x1 = ln(attn_out + X, params["g1"][0], params["b1"][0])
    out = x1 @ params["wl1_t"] + params["bl1"][0]
    return ln(out + x1, params["g2"][0], params["b2"][0])


# ----------------------------------------------------------------------------
# Main
# ----------------------------------------------------------------------------
if __name__ == "__main__":
    B, N, D, H = 8, 8, 32, 4      # 8 independent samples; seq=8, dim=32, 4 heads

    key = jax.random.PRNGKey(0)
    keys = jax.random.split(key, 12)
    scale = 0.1

    params = {
        # weights pre-transposed to (in, out)
        "wq_t": scale * jax.random.normal(keys[0], (D, D), jnp.float32),
        "wk_t": scale * jax.random.normal(keys[1], (D, D), jnp.float32),
        "wv_t": scale * jax.random.normal(keys[2], (D, D), jnp.float32),
        "wfc_t": scale * jax.random.normal(keys[3], (D, D), jnp.float32),
        "wl1_t": scale * jax.random.normal(keys[4], (D, D), jnp.float32),
        "bl1": scale * jax.random.normal(keys[5], (1, D), jnp.float32),
        # LayerNorm affine params, kept (1, D) for lane-friendly broadcast
        "g1": 1.0 + scale * jax.random.normal(keys[6], (1, D), jnp.float32),
        "b1": scale * jax.random.normal(keys[7], (1, D), jnp.float32),
        "g2": 1.0 + scale * jax.random.normal(keys[8], (1, D), jnp.float32),
        "b2": scale * jax.random.normal(keys[9], (1, D), jnp.float32),
    }
    X = jax.random.normal(keys[10], (B, N, D), jnp.float32)

    out = jax.block_until_ready(encoder_layer_forward(X, params, H))

    ref = jax.vmap(lambda xb: encoder_layer_reference(xb, params, H))(X)
    np.testing.assert_allclose(np.asarray(out), np.asarray(ref),
                               rtol=1e-4, atol=1e-4)
    print("KERNEL_OK")
</pallas_src>

<mosaic_0001>
module attributes {stable_mosaic.version = 11 : i64} {
  func.func @encoder_layer_kernel(%arg0: i32, %arg1: memref<64x32xf32, #tpu.memory_space<vmem>>, %arg2: memref<32x32xf32, #tpu.memory_space<vmem>>, %arg3: memref<32x32xf32, #tpu.memory_space<vmem>>, %arg4: memref<32x32xf32, #tpu.memory_space<vmem>>, %arg5: memref<4x32xf32, #tpu.memory_space<vmem>>, %arg6: memref<256x64xf32, #tpu.memory_space<vmem>>, %arg7: memref<4x32x8xf32, #tpu.memory_space<vmem>>, %arg8: memref<4x64x256xf32, #tpu.memory_space<vmem>>, %arg9: memref<1x32xf32, #tpu.memory_space<vmem>>, %arg10: memref<1x32xf32, #tpu.memory_space<vmem>>, %arg11: memref<32x32xf32, #tpu.memory_space<vmem>>, %arg12: memref<1x32xf32, #tpu.memory_space<vmem>>, %arg13: memref<1x32xf32, #tpu.memory_space<vmem>>, %arg14: memref<1x32xf32, #tpu.memory_space<vmem>>, %arg15: memref<64x32xf32, #tpu.memory_space<vmem>>) attributes {dimension_semantics = [#tpu.dimension_semantics<parallel>], iteration_bounds = array<i64: 1>, scalar_prefetch = 0 : i64, scratch_operands = 0 : i64, tpu.core_type = #tpu.core_type<tc>, window_params = [{transform_indices = @transform_0, window_bounds = array<i64: 64, 32>}, {pipeline_mode = #tpu.pipeline_mode<synchronous>, transform_indices = @transform_1, window_bounds = array<i64: 32, 32>}, {pipeline_mode = #tpu.pipeline_mode<synchronous>, transform_indices = @transform_2, window_bounds = array<i64: 32, 32>}, {pipeline_mode = #tpu.pipeline_mode<synchronous>, transform_indices = @transform_3, window_bounds = array<i64: 32, 32>}, {pipeline_mode = #tpu.pipeline_mode<synchronous>, transform_indices = @transform_4, window_bounds = array<i64: 4, 32>}, {pipeline_mode = #tpu.pipeline_mode<synchronous>, transform_indices = @transform_5, window_bounds = array<i64: 256, 64>}, {pipeline_mode = #tpu.pipeline_mode<synchronous>, transform_indices = @transform_6, window_bounds = array<i64: 4, 32, 8>}, {pipeline_mode = #tpu.pipeline_mode<synchronous>, transform_indices = @transform_7, window_bounds = array<i64: 4, 64, 256>}, {pipeline_mode = #tpu.pipeline_mode<synchronous>, transform_indices = @transform_8, window_bounds = array<i64: 1, 32>}, {pipeline_mode = #tpu.pipeline_mode<synchronous>, transform_indices = @transform_9, window_bounds = array<i64: 1, 32>}, {pipeline_mode = #tpu.pipeline_mode<synchronous>, transform_indices = @transform_10, window_bounds = array<i64: 32, 32>}, {pipeline_mode = #tpu.pipeline_mode<synchronous>, transform_indices = @transform_11, window_bounds = array<i64: 1, 32>}, {pipeline_mode = #tpu.pipeline_mode<synchronous>, transform_indices = @transform_12, window_bounds = array<i64: 1, 32>}, {pipeline_mode = #tpu.pipeline_mode<synchronous>, transform_indices = @transform_13, window_bounds = array<i64: 1, 32>}, {transform_indices = @transform_14, window_bounds = array<i64: 64, 32>}]} {
    %c0 = arith.constant 0 : index
    %c0_0 = arith.constant 0 : index
    %0 = vector.load %arg1[%c0, %c0_0] : memref<64x32xf32, #tpu.memory_space<vmem>>, vector<64x32xf32>
    %c0_1 = arith.constant 0 : index
    %c0_2 = arith.constant 0 : index
    %1 = vector.load %arg2[%c0_1, %c0_2] : memref<32x32xf32, #tpu.memory_space<vmem>>, vector<32x32xf32>
    %cst = arith.constant dense<0.000000e+00> : vector<64x32xf32>
    %2 = tpu.matmul %0, %1, %cst {dimension_numbers = #tpu.dot_dimension_numbers<[1], [0], [0], [1], [0, 0, 1, 1], [], []>} : vector<64x32xf32>, vector<32x32xf32>, vector<64x32xf32> -> vector<64x32xf32>
    %c0_3 = arith.constant 0 : index
    %c0_4 = arith.constant 0 : index
    %3 = vector.load %arg3[%c0_3, %c0_4] : memref<32x32xf32, #tpu.memory_space<vmem>>, vector<32x32xf32>
    %cst_5 = arith.constant dense<0.000000e+00> : vector<64x32xf32>
    %4 = tpu.matmul %0, %3, %cst_5 {dimension_numbers = #tpu.dot_dimension_numbers<[1], [0], [0], [1], [0, 0, 1, 1], [], []>} : vector<64x32xf32>, vector<32x32xf32>, vector<64x32xf32> -> vector<64x32xf32>
    %c0_6 = arith.constant 0 : index
    %c0_7 = arith.constant 0 : index
    %5 = vector.load %arg4[%c0_6, %c0_7] : memref<32x32xf32, #tpu.memory_space<vmem>>, vector<32x32xf32>
    %cst_8 = arith.constant dense<0.000000e+00> : vector<64x32xf32>
    %6 = tpu.matmul %0, %5, %cst_8 {dimension_numbers = #tpu.dot_dimension_numbers<[1], [0], [0], [1], [0, 0, 1, 1], [], []>} : vector<64x32xf32>, vector<32x32xf32>, vector<64x32xf32> -> vector<64x32xf32>
    %c0_9 = arith.constant 0 : index
    %c0_10 = arith.constant 0 : index
    %7 = vector.load %arg5[%c0_9, %c0_10] : memref<4x32xf32, #tpu.memory_space<vmem>>, vector<4x32xf32>
    %8 = vector.extract_strided_slice %7 {offsets = [0, 0], sizes = [1, 32], strides = [1, 1]} : vector<4x32xf32> to vector<1x32xf32>
    %9 = vector.broadcast %8 : vector<1x32xf32> to vector<64x32xf32>
    %10 = arith.mulf %2, %9 : vector<64x32xf32>
    %11 = vector.extract_strided_slice %7 {offsets = [1, 0], sizes = [1, 32], strides = [1, 1]} : vector<4x32xf32> to vector<1x32xf32>
    %12 = vector.broadcast %11 : vector<1x32xf32> to vector<64x32xf32>
    %13 = arith.mulf %2, %12 : vector<64x32xf32>
    %14 = vector.extract_strided_slice %7 {offsets = [2, 0], sizes = [1, 32], strides = [1, 1]} : vector<4x32xf32> to vector<1x32xf32>
    %15 = vector.broadcast %14 : vector<1x32xf32> to vector<64x32xf32>
    %16 = arith.mulf %2, %15 : vector<64x32xf32>
    %17 = vector.extract_strided_slice %7 {offsets = [3, 0], sizes = [1, 32], strides = [1, 1]} : vector<4x32xf32> to vector<1x32xf32>
    %18 = vector.broadcast %17 : vector<1x32xf32> to vector<64x32xf32>
    %19 = arith.mulf %2, %18 : vector<64x32xf32>
    %20 = tpu.concatenate %10, %13, %16, %19 in 0 : vector<64x32xf32>, vector<64x32xf32>, vector<64x32xf32>, vector<64x32xf32> -> vector<256x32xf32>
    %cst_11 = arith.constant dense<0.000000e+00> : vector<256x64xf32>
    %21 = tpu.matmul %20, %4, %cst_11 {dimension_numbers = #tpu.dot_dimension_numbers<[1], [1], [0], [0], [0, 0, 1, 0], [], []>} : vector<256x32xf32>, vector<64x32xf32>, vector<256x64xf32> -> vector<256x64xf32>
    %cst_12 = arith.constant 0.353553385 : f32
    %22 = vector.broadcast %cst_12 : f32 to vector<256x64xf32>
    %23 = arith.mulf %21, %22 : vector<256x64xf32>
    %c0_13 = arith.constant 0 : index
    %c0_14 = arith.constant 0 : index
    %24 = vector.load %arg6[%c0_13, %c0_14] : memref<256x64xf32, #tpu.memory_space<vmem>>, vector<256x64xf32>
    %25 = arith.addf %23, %24 : vector<256x64xf32>
    %cst_15 = arith.constant dense<0xFF800000> : vector<256xf32>
    %26 = vector.multi_reduction <maximumf>, %25, %cst_15 [1] : vector<256x64xf32> to vector<256xf32>
    %27 = vector.shape_cast %26 : vector<256xf32> to vector<256x1xf32>
    %28 = vector.broadcast %27 : vector<256x1xf32> to vector<256x64xf32>
    %29 = arith.subf %25, %28 : vector<256x64xf32>
    %30 = math.exp %29 : vector<256x64xf32>
    %cst_16 = arith.constant dense<0.000000e+00> : vector<256xf32>
    %31 = vector.multi_reduction <add>, %30, %cst_16 [1] : vector<256x64xf32> to vector<256xf32>
    %32 = vector.shape_cast %31 : vector<256xf32> to vector<256x1xf32>
    %33 = tpu.reciprocal %32 {approx = true} : vector<256x1xf32> -> vector<256x1xf32>
    %34 = arith.mulf %32, %33 : vector<256x1xf32>
    %cst_17 = arith.constant 2.000000e+00 : f32
    %35 = vector.broadcast %cst_17 : f32 to vector<256x1xf32>
    %36 = arith.subf %35, %34 : vector<256x1xf32>
    %37 = arith.mulf %33, %36 : vector<256x1xf32>
    %38 = vector.broadcast %37 : vector<256x1xf32> to vector<256x64xf32>
    %39 = arith.mulf %30, %38 : vector<256x64xf32>
    %cst_18 = arith.constant dense<0.000000e+00> : vector<256x32xf32>
    %40 = tpu.matmul %39, %6, %cst_18 {dimension_numbers = #tpu.dot_dimension_numbers<[1], [0], [0], [1], [0, 0, 1, 1], [], []>} : vector<256x64xf32>, vector<64x32xf32>, vector<256x32xf32> -> vector<256x32xf32>
    %cst_19 = arith.constant 0.000000e+00 : f32
    %41 = vector.broadcast %cst_19 : f32 to vector<64x32xf32>
    %42 = vector.extract_strided_slice %40 {offsets = [0, 0], sizes = [64, 32], strides = [1, 1]} : vector<256x32xf32> to vector<64x32xf32>
    %43 = vector.extract_strided_slice %7 {offsets = [0, 0], sizes = [1, 32], strides = [1, 1]} : vector<4x32xf32> to vector<1x32xf32>
    %44 = vector.broadcast %43 : vector<1x32xf32> to vector<64x32xf32>
    %45 = arith.mulf %42, %44 : vector<64x32xf32>
    %46 = arith.addf %41, %45 : vector<64x32xf32>
    %47 = vector.extract_strided_slice %40 {offsets = [64, 0], sizes = [64, 32], strides = [1, 1]} : vector<256x32xf32> to vector<64x32xf32>
    %48 = vector.extract_strided_slice %7 {offsets = [1, 0], sizes = [1, 32], strides = [1, 1]} : vector<4x32xf32> to vector<1x32xf32>
    %49 = vector.broadcast %48 : vector<1x32xf32> to vector<64x32xf32>
    %50 = arith.mulf %47, %49 : vector<64x32xf32>
    %51 = arith.addf %46, %50 : vector<64x32xf32>
    %52 = vector.extract_strided_slice %40 {offsets = [128, 0], sizes = [64, 32], strides = [1, 1]} : vector<256x32xf32> to vector<64x32xf32>
    %53 = vector.extract_strided_slice %7 {offsets = [2, 0], sizes = [1, 32], strides = [1, 1]} : vector<4x32xf32> to vector<1x32xf32>
    %54 = vector.broadcast %53 : vector<1x32xf32> to vector<64x32xf32>
    %55 = arith.mulf %52, %54 : vector<64x32xf32>
    %56 = arith.addf %51, %55 : vector<64x32xf32>
    %57 = vector.extract_strided_slice %40 {offsets = [192, 0], sizes = [64, 32], strides = [1, 1]} : vector<256x32xf32> to vector<64x32xf32>
    %58 = vector.extract_strided_slice %7 {offsets = [3, 0], sizes = [1, 32], strides = [1, 1]} : vector<4x32xf32> to vector<1x32xf32>
    %59 = vector.broadcast %58 : vector<1x32xf32> to vector<64x32xf32>
    %60 = arith.mulf %57, %59 : vector<64x32xf32>
    %61 = arith.addf %56, %60 : vector<64x32xf32>
    %cst_20 = arith.constant 0.000000e+00 : f32
    %62 = vector.broadcast %cst_20 : f32 to vector<8x256xf32>
    %c0_21 = arith.constant 0 : index
    %c0_22 = arith.constant 0 : index
    %c0_23 = arith.constant 0 : index
    %63 = vector.load %arg7[%c0_21, %c0_22, %c0_23] : memref<4x32x8xf32, #tpu.memory_space<vmem>>, vector<1x32x8xf32>
    %64 = vector.shape_cast %63 : vector<1x32x8xf32> to vector<32x8xf32>
    %cst_24 = arith.constant dense<0.000000e+00> : vector<64x8xf32>
    %65 = tpu.matmul %61, %64, %cst_24 {dimension_numbers = #tpu.dot_dimension_numbers<[1], [0], [0], [1], [0, 0, 1, 1], [], []>} : vector<64x32xf32>, vector<32x8xf32>, vector<64x8xf32> -> vector<64x8xf32>
    %c0_25 = arith.constant 0 : index
    %c0_26 = arith.constant 0 : index
    %c0_27 = arith.constant 0 : index
    %66 = vector.load %arg8[%c0_25, %c0_26, %c0_27] : memref<4x64x256xf32, #tpu.memory_space<vmem>>, vector<1x64x256xf32>
    %67 = vector.shape_cast %66 : vector<1x64x256xf32> to vector<64x256xf32>
    %cst_28 = arith.constant dense<0.000000e+00> : vector<8x256xf32>
    %68 = tpu.matmul %65, %67, %cst_28 {dimension_numbers = #tpu.dot_dimension_numbers<[0], [0], [1], [1], [0, 1, 1, 1], [], []>} : vector<64x8xf32>, vector<64x256xf32>, vector<8x256xf32> -> vector<8x256xf32>
    %69 = arith.addf %62, %68 : vector<8x256xf32>
    %c1 = arith.constant 1 : index
    %c0_29 = arith.constant 0 : index
    %c0_30 = arith.constant 0 : index
    %70 = vector.load %arg7[%c1, %c0_29, %c0_30] : memref<4x32x8xf32, #tpu.memory_space<vmem>>, vector<1x32x8xf32>
    %71 = vector.shape_cast %70 : vector<1x32x8xf32> to vector<32x8xf32>
    %cst_31 = arith.constant dense<0.000000e+00> : vector<64x8xf32>
    %72 = tpu.matmul %61, %71, %cst_31 {dimension_numbers = #tpu.dot_dimension_numbers<[1], [0], [0], [1], [0, 0, 1, 1], [], []>} : vector<64x32xf32>, vector<32x8xf32>, vector<64x8xf32> -> vector<64x8xf32>
    %c1_32 = arith.constant 1 : index
    %c0_33 = arith.constant 0 : index
    %c0_34 = arith.constant 0 : index
    %73 = vector.load %arg8[%c1_32, %c0_33, %c0_34] : memref<4x64x256xf32, #tpu.memory_space<vmem>>, vector<1x64x256xf32>
    %74 = vector.shape_cast %73 : vector<1x64x256xf32> to vector<64x256xf32>
    %cst_35 = arith.constant dense<0.000000e+00> : vector<8x256xf32>
    %75 = tpu.matmul %72, %74, %cst_35 {dimension_numbers = #tpu.dot_dimension_numbers<[0], [0], [1], [1], [0, 1, 1, 1], [], []>} : vector<64x8xf32>, vector<64x256xf32>, vector<8x256xf32> -> vector<8x256xf32>
    %76 = arith.addf %69, %75 : vector<8x256xf32>
    %c2 = arith.constant 2 : index
    %c0_36 = arith.constant 0 : index
    %c0_37 = arith.constant 0 : index
    %77 = vector.load %arg7[%c2, %c0_36, %c0_37] : memref<4x32x8xf32, #tpu.memory_space<vmem>>, vector<1x32x8xf32>
    %78 = vector.shape_cast %77 : vector<1x32x8xf32> to vector<32x8xf32>
    %cst_38 = arith.constant dense<0.000000e+00> : vector<64x8xf32>
    %79 = tpu.matmul %61, %78, %cst_38 {dimension_numbers = #tpu.dot_dimension_numbers<[1], [0], [0], [1], [0, 0, 1, 1], [], []>} : vector<64x32xf32>, vector<32x8xf32>, vector<64x8xf32> -> vector<64x8xf32>
    %c2_39 = arith.constant 2 : index
    %c0_40 = arith.constant 0 : index
    %c0_41 = arith.constant 0 : index
    %80 = vector.load %arg8[%c2_39, %c0_40, %c0_41] : memref<4x64x256xf32, #tpu.memory_space<vmem>>, vector<1x64x256xf32>
    %81 = vector.shape_cast %80 : vector<1x64x256xf32> to vector<64x256xf32>
    %cst_42 = arith.constant dense<0.000000e+00> : vector<8x256xf32>
    %82 = tpu.matmul %79, %81, %cst_42 {dimension_numbers = #tpu.dot_dimension_numbers<[0], [0], [1], [1], [0, 1, 1, 1], [], []>} : vector<64x8xf32>, vector<64x256xf32>, vector<8x256xf32> -> vector<8x256xf32>
    %83 = arith.addf %76, %82 : vector<8x256xf32>
    %c3 = arith.constant 3 : index
    %c0_43 = arith.constant 0 : index
    %c0_44 = arith.constant 0 : index
    %84 = vector.load %arg7[%c3, %c0_43, %c0_44] : memref<4x32x8xf32, #tpu.memory_space<vmem>>, vector<1x32x8xf32>
    %85 = vector.shape_cast %84 : vector<1x32x8xf32> to vector<32x8xf32>
    %cst_45 = arith.constant dense<0.000000e+00> : vector<64x8xf32>
    %86 = tpu.matmul %61, %85, %cst_45 {dimension_numbers = #tpu.dot_dimension_numbers<[1], [0], [0], [1], [0, 0, 1, 1], [], []>} : vector<64x32xf32>, vector<32x8xf32>, vector<64x8xf32> -> vector<64x8xf32>
    %c3_46 = arith.constant 3 : index
    %c0_47 = arith.constant 0 : index
    %c0_48 = arith.constant 0 : index
    %87 = vector.load %arg8[%c3_46, %c0_47, %c0_48] : memref<4x64x256xf32, #tpu.memory_space<vmem>>, vector<1x64x256xf32>
    %88 = vector.shape_cast %87 : vector<1x64x256xf32> to vector<64x256xf32>
    %cst_49 = arith.constant dense<0.000000e+00> : vector<8x256xf32>
    %89 = tpu.matmul %86, %88, %cst_49 {dimension_numbers = #tpu.dot_dimension_numbers<[0], [0], [1], [1], [0, 1, 1, 1], [], []>} : vector<64x8xf32>, vector<64x256xf32>, vector<8x256xf32> -> vector<8x256xf32>
    %90 = arith.addf %83, %89 : vector<8x256xf32>
    %91 = vector.extract_strided_slice %90 {offsets = [0, 0], sizes = [8, 32], strides = [1, 1]} : vector<8x256xf32> to vector<8x32xf32>
    %92 = vector.extract_strided_slice %90 {offsets = [0, 32], sizes = [8, 32], strides = [1, 1]} : vector<8x256xf32> to vector<8x32xf32>
    %93 = vector.extract_strided_slice %90 {offsets = [0, 64], sizes = [8, 32], strides = [1, 1]} : vector<8x256xf32> to vector<8x32xf32>
    %94 = vector.extract_strided_slice %90 {offsets = [0, 96], sizes = [8, 32], strides = [1, 1]} : vector<8x256xf32> to vector<8x32xf32>
    %95 = vector.extract_strided_slice %90 {offsets = [0, 128], sizes = [8, 32], strides = [1, 1]} : vector<8x256xf32> to vector<8x32xf32>
    %96 = vector.extract_strided_slice %90 {offsets = [0, 160], sizes = [8, 32], strides = [1, 1]} : vector<8x256xf32> to vector<8x32xf32>
    %97 = vector.extract_strided_slice %90 {offsets = [0, 192], sizes = [8, 32], strides = [1, 1]} : vector<8x256xf32> to vector<8x32xf32>
    %98 = vector.extract_strided_slice %90 {offsets = [0, 224], sizes = [8, 32], strides = [1, 1]} : vector<8x256xf32> to vector<8x32xf32>
    %99 = tpu.concatenate %91, %92, %93, %94, %95, %96, %97, %98 in 0 : vector<8x32xf32>, vector<8x32xf32>, vector<8x32xf32>, vector<8x32xf32>, vector<8x32xf32>, vector<8x32xf32>, vector<8x32xf32>, vector<8x32xf32> -> vector<64x32xf32>
    %100 = arith.addf %99, %0 : vector<64x32xf32>
    %cst_50 = arith.constant dense<0.000000e+00> : vector<64xf32>
    %101 = vector.multi_reduction <add>, %100, %cst_50 [1] : vector<64x32xf32> to vector<64xf32>
    %102 = vector.shape_cast %101 : vector<64xf32> to vector<64x1xf32>
    %cst_51 = arith.constant 3.200000e+01 : f32
    %103 = vector.broadcast %cst_51 : f32 to vector<64x1xf32>
    %104 = arith.divf %102, %103 : vector<64x1xf32>
    %105 = vector.broadcast %104 : vector<64x1xf32> to vector<64x32xf32>
    %106 = arith.subf %100, %105 : vector<64x32xf32>
    %107 = arith.mulf %106, %106 : vector<64x32xf32>
    %cst_52 = arith.constant dense<0.000000e+00> : vector<64xf32>
    %108 = vector.multi_reduction <add>, %107, %cst_52 [1] : vector<64x32xf32> to vector<64xf32>
    %109 = vector.shape_cast %108 : vector<64xf32> to vector<64x1xf32>
    %cst_53 = arith.constant 3.200000e+01 : f32
    %110 = vector.broadcast %cst_53 : f32 to vector<64x1xf32>
    %111 = arith.divf %109, %110 : vector<64x1xf32>
    %112 = vector.broadcast %104 : vector<64x1xf32> to vector<64x32xf32>
    %113 = arith.subf %100, %112 : vector<64x32xf32>
    %cst_54 = arith.constant 9.99999974E-6 : f32
    %114 = vector.broadcast %cst_54 : f32 to vector<64x1xf32>
    %115 = arith.addf %111, %114 : vector<64x1xf32>
    %116 = math.rsqrt %115 : vector<64x1xf32>
    %117 = vector.broadcast %116 : vector<64x1xf32> to vector<64x32xf32>
    %118 = arith.mulf %113, %117 : vector<64x32xf32>
    %c0_55 = arith.constant 0 : index
    %c0_56 = arith.constant 0 : index
    %119 = vector.load %arg9[%c0_55, %c0_56] : memref<1x32xf32, #tpu.memory_space<vmem>>, vector<1x32xf32>
    %120 = vector.broadcast %119 : vector<1x32xf32> to vector<64x32xf32>
    %121 = arith.mulf %118, %120 : vector<64x32xf32>
    %c0_57 = arith.constant 0 : index
    %c0_58 = arith.constant 0 : index
    %122 = vector.load %arg10[%c0_57, %c0_58] : memref<1x32xf32, #tpu.memory_space<vmem>>, vector<1x32xf32>
    %123 = vector.broadcast %122 : vector<1x32xf32> to vector<64x32xf32>
    %124 = arith.addf %121, %123 : vector<64x32xf32>
    %c0_59 = arith.constant 0 : index
    %c0_60 = arith.constant 0 : index
    %125 = vector.load %arg11[%c0_59, %c0_60] : memref<32x32xf32, #tpu.memory_space<vmem>>, vector<32x32xf32>
    %cst_61 = arith.constant dense<0.000000e+00> : vector<64x32xf32>
    %126 = tpu.matmul %124, %125, %cst_61 {dimension_numbers = #tpu.dot_dimension_numbers<[1], [0], [0], [1], [0, 0, 1, 1], [], []>} : vector<64x32xf32>, vector<32x32xf32>, vector<64x32xf32> -> vector<64x32xf32>
    %c0_62 = arith.constant 0 : index
    %c0_63 = arith.constant 0 : index
    %127 = vector.load %arg12[%c0_62, %c0_63] : memref<1x32xf32, #tpu.memory_space<vmem>>, vector<1x32xf32>
    %128 = vector.broadcast %127 : vector<1x32xf32> to vector<64x32xf32>
    %129 = arith.addf %126, %128 : vector<64x32xf32>
    %130 = arith.addf %129, %124 : vector<64x32xf32>
    %cst_64 = arith.constant dense<0.000000e+00> : vector<64xf32>
    %131 = vector.multi_reduction <add>, %130, %cst_64 [1] : vector<64x32xf32> to vector<64xf32>
    %132 = vector.shape_cast %131 : vector<64xf32> to vector<64x1xf32>
    %cst_65 = arith.constant 3.200000e+01 : f32
    %133 = vector.broadcast %cst_65 : f32 to vector<64x1xf32>
    %134 = arith.divf %132, %133 : vector<64x1xf32>
    %135 = vector.broadcast %134 : vector<64x1xf32> to vector<64x32xf32>
    %136 = arith.subf %130, %135 : vector<64x32xf32>
    %137 = arith.mulf %136, %136 : vector<64x32xf32>
    %cst_66 = arith.constant dense<0.000000e+00> : vector<64xf32>
    %138 = vector.multi_reduction <add>, %137, %cst_66 [1] : vector<64x32xf32> to vector<64xf32>
    %139 = vector.shape_cast %138 : vector<64xf32> to vector<64x1xf32>
    %cst_67 = arith.constant 3.200000e+01 : f32
    %140 = vector.broadcast %cst_67 : f32 to vector<64x1xf32>
    %141 = arith.divf %139, %140 : vector<64x1xf32>
    %142 = vector.broadcast %134 : vector<64x1xf32> to vector<64x32xf32>
    %143 = arith.subf %130, %142 : vector<64x32xf32>
    %cst_68 = arith.constant 9.99999974E-6 : f32
    %144 = vector.broadcast %cst_68 : f32 to vector<64x1xf32>
    %145 = arith.addf %141, %144 : vector<64x1xf32>
    %146 = math.rsqrt %145 : vector<64x1xf32>
    %147 = vector.broadcast %146 : vector<64x1xf32> to vector<64x32xf32>
    %148 = arith.mulf %143, %147 : vector<64x32xf32>
    %c0_69 = arith.constant 0 : index
    %c0_70 = arith.constant 0 : index
    %149 = vector.load %arg13[%c0_69, %c0_70] : memref<1x32xf32, #tpu.memory_space<vmem>>, vector<1x32xf32>
    %150 = vector.broadcast %149 : vector<1x32xf32> to vector<64x32xf32>
    %151 = arith.mulf %148, %150 : vector<64x32xf32>
    %c0_71 = arith.constant 0 : index
    %c0_72 = arith.constant 0 : index
    %152 = vector.load %arg14[%c0_71, %c0_72] : memref<1x32xf32, #tpu.memory_space<vmem>>, vector<1x32xf32>
    %153 = vector.broadcast %152 : vector<1x32xf32> to vector<64x32xf32>
    %154 = arith.addf %151, %153 : vector<64x32xf32>
    %c0_73 = arith.constant 0 : index
    %c0_74 = arith.constant 0 : index
    %155 = vector.load %arg15[%c0_73, %c0_74] : memref<64x32xf32, #tpu.memory_space<vmem>>, vector<64x32xf32>
    tpu.vector_store %arg15[%c0_73, %c0_74], %154 {strides = array<i32>} : memref<64x32xf32, #tpu.memory_space<vmem>>, vector<64x32xf32>,
    return
  }
  func.func @transform_0(%arg0: i32) -> (i32, i32) {
    %c0_i32 = arith.constant 0 : i32
    %c0_i32_0 = arith.constant 0 : i32
    return %arg0, %c0_i32 : i32, i32
  }
  func.func @transform_1(%arg0: i32) -> (i32, i32) {
    %c0_i32 = arith.constant 0 : i32
    %c0_i32_0 = arith.constant 0 : i32
    %c0_i32_1 = arith.constant 0 : i32
    return %c0_i32, %c0_i32_0 : i32, i32
  }
  func.func @transform_2(%arg0: i32) -> (i32, i32) {
    %c0_i32 = arith.constant 0 : i32
    %c0_i32_0 = arith.constant 0 : i32
    %c0_i32_1 = arith.constant 0 : i32
    return %c0_i32, %c0_i32_0 : i32, i32
  }
  func.func @transform_3(%arg0: i32) -> (i32, i32) {
    %c0_i32 = arith.constant 0 : i32
    %c0_i32_0 = arith.constant 0 : i32
    %c0_i32_1 = arith.constant 0 : i32
    return %c0_i32, %c0_i32_0 : i32, i32
  }
  func.func @transform_4(%arg0: i32) -> (i32, i32) {
    %c0_i32 = arith.constant 0 : i32
    %c0_i32_0 = arith.constant 0 : i32
    %c0_i32_1 = arith.constant 0 : i32
    return %c0_i32, %c0_i32_0 : i32, i32
  }
  func.func @transform_5(%arg0: i32) -> (i32, i32) {
    %c0_i32 = arith.constant 0 : i32
    %c0_i32_0 = arith.constant 0 : i32
    %c0_i32_1 = arith.constant 0 : i32
    return %c0_i32, %c0_i32_0 : i32, i32
  }
  func.func @transform_6(%arg0: i32) -> (i32, i32, i32) {
    %c0_i32 = arith.constant 0 : i32
    %c0_i32_0 = arith.constant 0 : i32
    %c0_i32_1 = arith.constant 0 : i32
    %c0_i32_2 = arith.constant 0 : i32
    return %c0_i32, %c0_i32_0, %c0_i32_1 : i32, i32, i32
  }
  func.func @transform_7(%arg0: i32) -> (i32, i32, i32) {
    %c0_i32 = arith.constant 0 : i32
    %c0_i32_0 = arith.constant 0 : i32
    %c0_i32_1 = arith.constant 0 : i32
    %c0_i32_2 = arith.constant 0 : i32
    return %c0_i32, %c0_i32_0, %c0_i32_1 : i32, i32, i32
  }
  func.func @transform_8(%arg0: i32) -> (i32, i32) {
    %c0_i32 = arith.constant 0 : i32
    %c0_i32_0 = arith.constant 0 : i32
    %c0_i32_1 = arith.constant 0 : i32
    return %c0_i32, %c0_i32_0 : i32, i32
  }
  func.func @transform_9(%arg0: i32) -> (i32, i32) {
    %c0_i32 = arith.constant 0 : i32
    %c0_i32_0 = arith.constant 0 : i32
    %c0_i32_1 = arith.constant 0 : i32
    return %c0_i32, %c0_i32_0 : i32, i32
  }
  func.func @transform_10(%arg0: i32) -> (i32, i32) {
    %c0_i32 = arith.constant 0 : i32
    %c0_i32_0 = arith.constant 0 : i32
    %c0_i32_1 = arith.constant 0 : i32
    return %c0_i32, %c0_i32_0 : i32, i32
  }
  func.func @transform_11(%arg0: i32) -> (i32, i32) {
    %c0_i32 = arith.constant 0 : i32
    %c0_i32_0 = arith.constant 0 : i32
    %c0_i32_1 = arith.constant 0 : i32
    return %c0_i32, %c0_i32_0 : i32, i32
  }
  func.func @transform_12(%arg0: i32) -> (i32, i32) {
    %c0_i32 = arith.constant 0 : i32
    %c0_i32_0 = arith.constant 0 : i32
    %c0_i32_1 = arith.constant 0 : i32
    return %c0_i32, %c0_i32_0 : i32, i32
  }
  func.func @transform_13(%arg0: i32) -> (i32, i32) {
    %c0_i32 = arith.constant 0 : i32
    %c0_i32_0 = arith.constant 0 : i32
    %c0_i32_1 = arith.constant 0 : i32
    return %c0_i32, %c0_i32_0 : i32, i32
  }
  func.func @transform_14(%arg0: i32) -> (i32, i32) {
    %c0_i32 = arith.constant 0 : i32
    %c0_i32_0 = arith.constant 0 : i32
    return %arg0, %c0_i32 : i32, i32
  }
}

</mosaic_0001>

<bundles_post_ra>
// kernel: tpu_custom_call.1
= control target key start
LH: loop header
LB: loop body
LE: loop exit
PB: predicated region body
PF: predicated region fallthrough
CT: control target
= control target key end

     0   :  { %vm59_vm0 = vcmask 261120   ;;  %v408_v20 = vlaneseq  ;;  %vm897_vm2 = vcmask 523264   ;;  %s4163_s27 = smov 96   ;;  %s5507_s2 = inlined_call_operand.vmem [shape: f32[32,32], index: 2, kind: input, shape index: {}]   ;;  %s5508_s0 = inlined_call_operand.vmem [shape: f32[64,32], index: 0, kind: input, shape index: {}]   ;;  %s5509_s1 = inlined_call_operand.vmem [shape: f32[32,32], index: 1, kind: input, shape index: {}]   ;;  %s5510_s4 = inlined_call_operand.vmem [shape: f32[4,32], index: 4, kind: input, shape index: {}]   ;;  %s5511_s3 = inlined_call_operand.vmem [shape: f32[32,32], index: 3, kind: input, shape index: {}]   ;;  %s5512_s5 = inlined_call_operand.vmem [shape: f32[256,64], index: 5, kind: input, shape index: {}]   ;;  %s5513_s6 = inlined_call_operand.vmem [shape: f32[4,32,8], index: 6, kind: input, shape index: {}]   ;;  %s5514_s7 = inlined_call_operand.vmem [shape: f32[4,64,256], index: 7, kind: input, shape index: {}]   ;;  %s5515_s10 = inlined_call_operand.vmem [shape: f32[32,32], index: 10, kind: input, shape index: {}]   ;;  %s5516_s8 = inlined_call_operand.vmem [shape: f32[1,32], index: 8, kind: input, shape index: {}]   ;;  %s5517_s9 = inlined_call_operand.vmem [shape: f32[1,32], index: 9, kind: input, shape index: {}]   ;;  %s5518_s11 = inlined_call_operand.vmem [shape: f32[1,32], index: 11, kind: input, shape index: {}]   ;;  %s5519_s12 = inlined_call_operand.vmem [shape: f32[1,32], index: 12, kind: input, shape index: {}]   ;;  %s5520_s13 = inlined_call_operand.vmem [shape: f32[1,32], index: 13, kind: input, shape index: {}]   ;;  %s5521_s14 = inlined_call_operand.vmem [shape: f32[64,32], index: 14, kind: output, shape index: {}]  }
   0x1   :  { %v189_v0 = vld [vmem:[%s5507_s2] sm:$0xff]  ;;  %v190_v1 = vld [vmem:[%s5507_s2 + $0x8] sm:$0xff]  ;;  %v191_v2 = vld [vmem:[%s5507_s2 + $0x10] sm:$0xff] }
   0x2   :  { %v3823_v3 = vpack.c.bf16 %v190_v1, %v189_v0  ;;  %v192_v4 = vld [vmem:[%s5507_s2 + $0x18] sm:$0xff]  ;;  %v47_v5 = vld [vmem:[%s5508_s0] sm:$0xff]  ;;  %v56_v8 = vld [vmem:[%s5509_s1 + $0x8] sm:$0xff]  ;;  %v4333_v21 = vshrl.u32 %v408_v20, 7  ;;  %s4162_s2 = smov 64  }
   0x3   :  { %v3827_v6 = vpack.c.bf16 %v192_v4, %v191_v2  ;;  %3555 = vmatprep.mubr.msk.f32.mxu1 %vm59_vm0, %v47_v5  ;;  %3535 = vmatprep.mubr.msk.f32.mxu0 %vm59_vm0, %v47_v5  ;;  %v55_v7 = vld [vmem:[%s5509_s1] sm:$0xff]  ;;  %v57_v10 = vld [vmem:[%s5509_s1 + $0x10] sm:$0xff]  ;;  %v58_v11 = vld [vmem:[%s5509_s1 + $0x18] sm:$0xff] }
   0x4   :  { %3824 = vmatprep.subr.bf16.mxu1 %v3823_v3  ;;  %v3815_v9 = vpack.c.bf16 %v56_v8, %v55_v7  ;;  %v3819_v12 = vpack.c.bf16 %v58_v11, %v57_v10  ;;  %v4272_v13 = vld [vmem:[%s5508_s0 + $0x8] sm:$0xff]  ;;  %v4277_v14 = vld [vmem:[%s5508_s0 + $0x10] sm:$0xff]  ;;  %v4286_v15 = vld [vmem:[%s5508_s0 + $0x18] sm:$0xff]  ;;  %v446_v22 = vsub.s32 3, %v4333_v21  ;;  %v410_v25 = vsub.s32 0, %v4333_v21 }
   0x5   :  { %3826 = vmatpush3.bf16.msra.mxu1 %v3823_v3  ;;  %v4291_v16 = vld [vmem:[%s5508_s0 + $0x20] sm:$0xff]  ;;  %v4304_v17 = vld [vmem:[%s5508_s0 + $0x28] sm:$0xff]  ;;  %v4309_v18 = vld [vmem:[%s5508_s0 + $0x30] sm:$0xff]  ;;  %v422_v53 = vsub.s32 1, %v4333_v21  ;;  %v434_v62 = vsub.s32 2, %v4333_v21 }
   0x6   :  { %3828 = vmatprep.subr.bf16.mxu1 %v3827_v6  ;;  %3816 = vmatprep.subr.bf16.mxu0 %v3815_v9  ;;  %v4322_v19 = vld [vmem:[%s5508_s0 + $0x38] sm:$0xff]  ;;  %v4339_v23 = vld [vmem:[%s5510_s4] sm:$0xf]  ;;  %vm4347_vm1 = vmpackc.low %vm59_vm0, %vm59_vm0  ;;  %s4164_s4 = smov 32  }
   0x7   :  { %3818 = vmatpush3.bf16.msra.mxu0 %v3815_v9  ;;  %v4342_v24 = vrot.slane %v4339_v23, %v446_v22  ;;  %v4352_v29 = vrot.slane %v4339_v23, %v410_v25  ;;  %v4407_v56 = vrot.slane %v4339_v23, %v422_v53  ;;  %v4433_v1 = vrot.slane %v4339_v23, %v434_v62  ;;  %v298_v28 = vld [vmem:[%s5511_s3] sm:$0xff] }
   0x8   :  { %3820 = vmatprep.subr.bf16.mxu0 %v3819_v12 }
   0x9   :  { %3830 = vmatpush3.bf16.msra.mxu1 %v3827_v6 }
   0xb   :  { %3822 = vmatpush3.bf16.msra.mxu0 %v3819_v12 }
   0xc   :  { %3556 = vmatmul.mubr.msk.f32.vlgmr.msra.gmra.mrb[0].mxu1 %vm59_vm0, %v4272_v13 }
   0xd   :  { %3558 = vmatprep.mubr.msk.f32.mxu1 %vm59_vm0, %v4277_v14 }
   0xe   :  { %3536 = vmatmul.mubr.msk.f32.vlgmr.msra.gmra.mrb[0].mxu0 %vm59_vm0, %v4272_v13 }
   0xf   :  { %3538 = vmatprep.mubr.msk.f32.mxu0 %vm59_vm0, %v4277_v14 }
  0x10   :  { %3559 = vmatmul.mubr.msk.f32.gmra.mrb[2].mxu1 %vm59_vm0, %v4286_v15 }
  0x11   :  { %3561 = vmatprep.mubr.msk.f32.mxu1 %vm59_vm0, %v4291_v16 }
  0x12   :  { %3539 = vmatmul.mubr.msk.f32.gmra.mrb[2].mxu0 %vm59_vm0, %v4286_v15 }
  0x13   :  { %3541 = vmatprep.mubr.msk.f32.mxu0 %vm59_vm0, %v4291_v16 }
  0x14   :  { %3562 = vmatmul.mubr.msk.f32.gmra.mrb[4].mxu1 %vm59_vm0, %v4304_v17 }
  0x15   :  { %3564 = vmatprep.mubr.msk.f32.mxu1 %vm59_vm0, %v4309_v18 }
  0x16   :  { %3542 = vmatmul.mubr.msk.f32.gmra.mrb[4].mxu0 %vm59_vm0, %v4304_v17 }
  0x17   :  { %3544 = vmatprep.mubr.msk.f32.mxu0 %vm59_vm0, %v4309_v18 }
  0x18   :  { %3565 = vmatmul.mubr.msk.f32.gmra.mrb[6].mxu1 %vm59_vm0, %v4322_v19 }
  0x1a   :  { %3545 = vmatmul.mubr.msk.f32.gmra.mrb[6].mxu0 %vm59_vm0, %v4322_v19 }
  0x1b   :  { %3575 = vmatprep.mubr.msk.f32.mxu0 %vm59_vm0, %v47_v5 }
  0xdf   :  { %v3557_v26 = vpop.f32.mrb[0].mxu1 }
  0xe0   :  { %v259_v27 = vpop.f32.mrb[1].mxu1 }
  0xe1   :  { %v3839_v30 = vpack.c.bf16 %v3557_v26, %v259_v27  ;;  %v4354_v31 = vpop.f32.mrb[0].mxu0 }
  0xe2   :  { %v4358_v33 = vpop.f32.mrb[1].mxu0  ;;  %v413_v50 = vmul.f32 %v4354_v31, %v4352_v29  ;;  %v425_v59 = vmul.f32 %v4354_v31, %v4407_v56  ;;  %v437_v5 = vmul.f32 %v4354_v31, %v4433_v1  ;;  %v449_v20 = vmul.f32 %v4354_v31, %v4342_v24  ;;  %v300_v31 = vld [vmem:[%s5511_s3 + $0x10] sm:$0xff] }
  0xe3   :  { %3841 = vmatprep.subr.msk.bf16.mxu1 %vm4347_vm1, %v3839_v30  ;;  %v3560_v32 = vpop.f32.mrb[2].mxu1  ;;  %v412_v35 = vmul.f32 %v4352_v29, %v4358_v33  ;;  %v424_v58 = vmul.f32 %v4407_v56, %v4358_v33  ;;  %v436_v4 = vmul.f32 %v4433_v1, %v4358_v33  ;;  %v448_v12 = vmul.f32 %v4342_v24, %v4358_v33  ;;  %v301_v33 = vld [vmem:[%s5511_s3 + $0x18] sm:$0xff] }
  0xe4   :  { %3844 = vmatpush3.bf16.xpose.msk.msra.mxu1 %vm4347_vm1, %v3839_v30  ;;  %v269_v34 = vpop.f32.mrb[3].mxu1  ;;  %v299_v30 = vld [vmem:[%s5511_s3 + $0x8] sm:$0xff] }
  0xe5   :  { %v3845_v36 = vpack.c.bf16 %v3560_v32, %v269_v34  ;;  %v4364_v37 = vpop.f32.mrb[2].mxu0  ;;  %3603 = vmatprep.mubr.msk.f32.mxu1 %vm59_vm0, %v412_v35  ;;  %v3831_v32 = vpack.c.bf16 %v299_v30, %v298_v28  ;;  %v3835_v34 = vpack.c.bf16 %v301_v33, %v300_v31  ;;  %v844_v28 = vld [vmem:[%s5512_s5 + $0x58] sm:$0xff] }
  0xe6   :  { %v4369_v39 = vpop.f32.mrb[3].mxu0  ;;  %v415_v52 = vmul.f32 %v4364_v37, %v4352_v29  ;;  %v427_v61 = vmul.f32 %v4364_v37, %v4407_v56  ;;  %v439_v7 = vmul.f32 %v4364_v37, %v4433_v1  ;;  %v451_v22 = vmul.f32 %v4364_v37, %v4342_v24 }
  0xe7   :  { %3847 = vmatprep.subr.msk.bf16.mxu1 %vm4347_vm1, %v3845_v36  ;;  %v3563_v38 = vpop.f32.mrb[4].mxu1  ;;  %v414_v49 = vmul.f32 %v4352_v29, %v4369_v39  ;;  %v426_v60 = vmul.f32 %v4407_v56, %v4369_v39  ;;  %v438_v6 = vmul.f32 %v4433_v1, %v4369_v39  ;;  %v450_v21 = vmul.f32 %v4342_v24, %v4369_v39 }
  0xe8   :  { %v279_v40 = vpop.f32.mrb[5].mxu1  ;;  %3832 = vmatprep.subr.bf16.mxu0 %v3831_v32 }
  0xe9   :  { %v3851_v41 = vpack.c.bf16 %v3563_v38, %v279_v40  ;;  %v4371_v42 = vpop.f32.mrb[4].mxu0  ;;  %3834 = vmatpush3.bf16.msra.mxu0 %v3831_v32 }
  0xea   :  { %v4373_v44 = vpop.f32.mrb[5].mxu0  ;;  %v417_v54 = vmul.f32 %v4371_v42, %v4352_v29  ;;  %v429_v0 = vmul.f32 %v4371_v42, %v4407_v56  ;;  %v441_v9 = vmul.f32 %v4371_v42, %v4433_v1  ;;  %v453_v25 = vmul.f32 %v4371_v42, %v4342_v24  ;;  %3836 = vmatprep.subr.bf16.mxu0 %v3835_v34  ;;  %v836_v42 = vld [vmem:[%s5512_s5 + $0x18] sm:$0xff] }
  0xeb   :  { %v3566_v43 = vpop.f32.mrb[6].mxu1  ;;  %v416_v51 = vmul.f32 %v4352_v29, %v4373_v44  ;;  %v428_v63 = vmul.f32 %v4407_v56, %v4373_v44  ;;  %v440_v8 = vmul.f32 %v4433_v1, %v4373_v44  ;;  %v452_v23 = vmul.f32 %v4342_v24, %v4373_v44 }
  0xec   :  { %3850 = vmatpush3.bf16.xpose.msk.msra.mxu1 %vm4347_vm1, %v3845_v36  ;;  %v289_v45 = vpop.f32.mrb[7].mxu1 }
  0xed   :  { %3853 = vmatprep.subr.msk.bf16.mxu1 %vm4347_vm1, %v3851_v41  ;;  %v3857_v46 = vpack.c.bf16 %v3566_v43, %v289_v45  ;;  %v4379_v47 = vpop.f32.mrb[6].mxu0  ;;  %3838 = vmatpush3.bf16.msra.mxu0 %v3835_v34  ;;  %v845_v34 = vld [vmem:[%s5512_s5 + $0x60] sm:$0xff] }
  0xee   :  { %v4381_v48 = vpop.f32.mrb[7].mxu0  ;;  %v419_v57 = vmul.f32 %v4379_v47, %v4352_v29  ;;  %v431_v3 = vmul.f32 %v4379_v47, %v4407_v56  ;;  %v443_v11 = vmul.f32 %v4379_v47, %v4433_v1  ;;  %v455_v27 = vmul.f32 %v4379_v47, %v4342_v24  ;;  %v837_v47 = vld [vmem:[%s5512_s5 + $0x20] sm:$0xff] }
  0xef   :  { %v418_v55 = vmul.f32 %v4352_v29, %v4381_v48  ;;  %v430_v2 = vmul.f32 %v4407_v56, %v4381_v48  ;;  %v442_v10 = vmul.f32 %v4433_v1, %v4381_v48  ;;  %v454_v26 = vmul.f32 %v4342_v24, %v4381_v48 }
  0xf0   :  { %3576 = vmatmul.mubr.msk.f32.vlgmr.msra.gmra.mrb[8].mxu0 %vm59_vm0, %v4272_v13 }
  0xf1   :  { %3578 = vmatprep.mubr.msk.f32.mxu0 %vm59_vm0, %v4277_v14  ;;  %v833_v14 = vld [vmem:[%s5512_s5] sm:$0xff] }
  0xf4   :  { %3856 = vmatpush3.bf16.xpose.msk.msra.mxu1 %vm4347_vm1, %v3851_v41  ;;  %3579 = vmatmul.mubr.msk.f32.gmra.mrb[10].mxu0 %vm59_vm0, %v4286_v15 }
  0xf5   :  { %3859 = vmatprep.subr.msk.bf16.mxu1 %vm4347_vm1, %v3857_v46  ;;  %3581 = vmatprep.mubr.msk.f32.mxu0 %vm59_vm0, %v4291_v16  ;;  %v834_v16 = vld [vmem:[%s5512_s5 + $0x8] sm:$0xff] }
  0xf8   :  { %3582 = vmatmul.mubr.msk.f32.gmra.mrb[12].mxu0 %vm59_vm0, %v4304_v17 }
  0xf9   :  { %3584 = vmatprep.mubr.msk.f32.mxu0 %vm59_vm0, %v4309_v18 }
  0xfc   :  { %3862 = vmatpush3.bf16.xpose.msk.msra.mxu1 %vm4347_vm1, %v3857_v46  ;;  %3585 = vmatmul.mubr.msk.f32.gmra.mrb[14].mxu0 %vm59_vm0, %v4322_v19  ;;  %v835_v19 = vld [vmem:[%s5512_s5 + $0x10] sm:$0xff] }
 0x103   :  { %3604 = vmatmul.mubr.msk.f32.vlgmr.msra.gmra.mrb[8].mxu1 %vm59_vm0, %v413_v50 }
 0x104   :  { %3606 = vmatprep.mubr.msk.f32.mxu1 %vm59_vm0, %v414_v49 }
 0x107   :  { %3607 = vmatmul.mubr.msk.f32.gmra.mrb[10].mxu1 %vm59_vm0, %v415_v52  ;;  %v838_v52 = vld [vmem:[%s5512_s5 + $0x28] sm:$0xff] }
 0x108   :  { %3609 = vmatprep.mubr.msk.f32.mxu1 %vm59_vm0, %v416_v51 }
 0x10b   :  { %3610 = vmatmul.mubr.msk.f32.gmra.mrb[12].mxu1 %vm59_vm0, %v417_v54 }
 0x10c   :  { %3612 = vmatprep.mubr.msk.f32.mxu1 %vm59_vm0, %v418_v55 }
 0x10f   :  { %3613 = vmatmul.mubr.msk.f32.gmra.mrb[14].mxu1 %vm59_vm0, %v419_v57 }
 0x110   :  { %3615 = vmatprep.mubr.msk.f32.mxu1 %vm59_vm0, %v424_v58  ;;  %v839_v58 = vld [vmem:[%s5512_s5 + $0x30] sm:$0xff] }
 0x113   :  { %3616 = vmatmul.mubr.msk.f32.gmra.mrb[16].mxu1 %vm59_vm0, %v425_v59 }
 0x114   :  { %3618 = vmatprep.mubr.msk.f32.mxu1 %vm59_vm0, %v426_v60 }
 0x117   :  { %3619 = vmatmul.mubr.msk.f32.gmra.mrb[18].mxu1 %vm59_vm0, %v427_v61 }
 0x118   :  { %3621 = vmatprep.mubr.msk.f32.mxu1 %vm59_vm0, %v428_v63  ;;  %v840_v63 = vld [vmem:[%s5512_s5 + $0x38] sm:$0xff] }
 0x11b   :  { %3622 = vmatmul.mubr.msk.f32.gmra.mrb[20].mxu1 %vm59_vm0, %v429_v0 }
 0x11c   :  { %3624 = vmatprep.mubr.msk.f32.mxu1 %vm59_vm0, %v430_v2 }
 0x11f   :  { %3625 = vmatmul.mubr.msk.f32.gmra.mrb[22].mxu1 %vm59_vm0, %v431_v3 }
 0x120   :  { %3627 = vmatprep.mubr.msk.f32.mxu1 %vm59_vm0, %v436_v4 }
 0x123   :  { %3628 = vmatmul.mubr.msk.f32.gmra.mrb[24].mxu1 %vm59_vm0, %v437_v5  ;;  %v841_v5 = vld [vmem:[%s5512_s5 + $0x40] sm:$0xff] }
 0x124   :  { %3630 = vmatprep.mubr.msk.f32.mxu1 %vm59_vm0, %v438_v6 }
 0x127   :  { %3631 = vmatmul.mubr.msk.f32.gmra.mrb[26].mxu1 %vm59_vm0, %v439_v7 }
 0x128   :  { %3633 = vmatprep.mubr.msk.f32.mxu1 %vm59_vm0, %v440_v8 }
 0x12b   :  { %3634 = vmatmul.mubr.msk.f32.gmra.mrb[28].mxu1 %vm59_vm0, %v441_v9 }
 0x12c   :  { %3636 = vmatprep.mubr.msk.f32.mxu1 %vm59_vm0, %v442_v10  ;;  %v842_v10 = vld [vmem:[%s5512_s5 + $0x48] sm:$0xff] }
 0x12f   :  { %3637 = vmatmul.mubr.msk.f32.gmra.mrb[30].mxu1 %vm59_vm0, %v443_v11 }
 0x130   :  { %3639 = vmatprep.mubr.msk.f32.mxu1 %vm59_vm0, %v448_v12 }
 0x133   :  { %3640 = vmatmul.mubr.msk.f32.gmra.mrb[32].mxu1 %vm59_vm0, %v449_v20 }
 0x134   :  { %3642 = vmatprep.mubr.msk.f32.mxu1 %vm59_vm0, %v450_v21 }
 0x137   :  { %3643 = vmatmul.mubr.msk.f32.gmra.mrb[34].mxu1 %vm59_vm0, %v451_v22  ;;  %v843_v22 = vld [vmem:[%s5512_s5 + $0x50] sm:$0xff] }
 0x138   :  { %3645 = vmatprep.mubr.msk.f32.mxu1 %vm59_vm0, %v452_v23 }
 0x13b   :  { %3646 = vmatmul.mubr.msk.f32.gmra.mrb[36].mxu1 %vm59_vm0, %v453_v25 }
 0x13c   :  { %3648 = vmatprep.mubr.msk.f32.mxu1 %vm59_vm0, %v454_v26 }
 0x13f   :  { %3649 = vmatmul.mubr.msk.f32.gmra.mrb[38].mxu1 %vm59_vm0, %v455_v27 }
 0x1d6   :  { %v3605_v35 = vpop.f32.mrb[8].mxu1 }
 0x1d7   :  { %v802_v13 = vmul.f32 0.35355338, %v3605_v35  ;;  %v642_v36 = vpop.f32.mrb[9].mxu1 }
 0x1d8   :  { %v801_v15 = vmul.f32 0.35355338, %v642_v36 }
 0x1d9   :  { %v4524_v38 = vadd.f32 %v834_v16, %v802_v13 }
 0x1da   :  { %v3608_v17 = vpop.f32.mrb[10].mxu1  ;;  %v4522_v37 = vadd.f32 %v833_v14, %v801_v15  ;;  %v846_v15 = vld [vmem:[%s5512_s5 + $0x68] sm:$0xff] }
 0x1db   :  { %v652_v18 = vpop.f32.mrb[11].mxu1  ;;  %v804_v39 = vmul.f32 0.35355338, %v3608_v17  ;;  %v901_v46 = vsel %vm897_vm2, %v4524_v38, -inf }
 0x1dc   :  { %v803_v40 = vmul.f32 0.35355338, %v652_v18  ;;  %v898_v41 = vsel %vm897_vm2, %v4522_v37, -inf }
 0x1dd   :  { %899 = vmax.xlane.f32.xlu0 %v898_v41  ;;  %v4543_v51 = vadd.f32 %v836_v42, %v804_v39  ;;  %v847_v39 = vld [vmem:[%s5512_s5 + $0x70] sm:$0xff] }
 0x1de   :  { %v3611_v43 = vpop.f32.mrb[12].mxu1  ;;  %v4534_v44 = vadd.f32 %v835_v19, %v803_v40 }
 0x1df   :  { %v662_v45 = vpop.f32.mrb[13].mxu1  ;;  %v806_v48 = vmul.f32 0.35355338, %v3611_v43  ;;  %v907_v60 = vsel %vm897_vm2, %v4543_v51, -inf }
 0x1e0   :  { %v805_v49 = vmul.f32 0.35355338, %v662_v45  ;;  %v904_v50 = vsel %vm897_vm2, %v4534_v44, -inf  ;;  %v848_v45 = vld [vmem:[%s5512_s5 + $0x78] sm:$0xff] }
 0x1e1   :  { %902 = vmax.xlane.f32.xlu0 %v901_v46  ;;  %905 = vmax.xlane.f32.xlu1 %v904_v50  ;;  %v4557_v62 = vadd.f32 %v838_v52, %v806_v48  ;;  %v849_v50 = vld [vmem:[%s5512_s5 + $0x80] sm:$0xff] }
 0x1e2   :  { %v3614_v53 = vpop.f32.mrb[14].mxu1  ;;  %v4548_v54 = vadd.f32 %v837_v47, %v805_v49 }
 0x1e3   :  { %v808_v55 = vmul.f32 0.35355338, %v3614_v53  ;;  %v672_v57 = vpop.f32.mrb[15].mxu1  ;;  %v913_v8 = vsel %vm897_vm2, %v4557_v62, -inf }
 0x1e4   :  { %v807_v59 = vmul.f32 0.35355338, %v672_v57  ;;  %v910_v61 = vsel %vm897_vm2, %v4548_v54, -inf }
 0x1e5   :  { %908 = vmax.xlane.f32.xlu1 %v907_v60  ;;  %911 = vmax.xlane.f32.xlu0 %v910_v61  ;;  %v4564_v4 = vadd.f32 %v840_v63, %v808_v55 }
 0x1e6   :  { %v3617_v0 = vpop.f32.mrb[16].mxu1  ;;  %v4562_v2 = vadd.f32 %v839_v58, %v807_v59  ;;  %v850_v58 = vld [vmem:[%s5512_s5 + $0x88] sm:$0xff] }
 0x1e7   :  { %v682_v3 = vpop.f32.mrb[17].mxu1  ;;  %v810_v6 = vmul.f32 0.35355338, %v3617_v0  ;;  %v919_v21 = vsel %vm897_vm2, %v4564_v4, -inf  ;;  %v851_v0 = vld [vmem:[%s5512_s5 + $0x90] sm:$0xff] }
 0x1e8   :  { %v809_v7 = vmul.f32 0.35355338, %v682_v3  ;;  %v916_v9 = vsel %vm897_vm2, %v4562_v2, -inf }
 0x1e9   :  { %914 = vmax.xlane.f32.xlu1 %v913_v8  ;;  %917 = vmax.xlane.f32.xlu0 %v916_v9  ;;  %v4585_v27 = vadd.f32 %v842_v10, %v810_v6  ;;  %v852_v8 = vld [vmem:[%s5512_s5 + $0x98] sm:$0xff] }
 0x1ea   :  { %v3620_v11 = vpop.f32.mrb[18].mxu1  ;;  %v4576_v12 = vadd.f32 %v841_v5, %v809_v7 }
 0x1eb   :  { %v692_v20 = vpop.f32.mrb[19].mxu1  ;;  %v812_v23 = vmul.f32 0.35355338, %v3620_v11  ;;  %v925_v13 = vsel %vm897_vm2, %v4585_v27, -inf }
 0x1ec   :  { %v811_v25 = vmul.f32 0.35355338, %v692_v20  ;;  %v922_v26 = vsel %vm897_vm2, %v4576_v12, -inf }
 0x1ed   :  { %920 = vmax.xlane.f32.xlu1 %v919_v21  ;;  %923 = vmax.xlane.f32.xlu0 %v922_v26  ;;  %v4599_v14 = vadd.f32 %v844_v28, %v812_v23  ;;  %v853_v21 = vld [vmem:[%s5512_s5 + $0xa0] sm:$0xff]  ;;  %v854_v28 = vld [vmem:[%s5512_s5 + $0xa8] sm:$0xff] }
 0x1ee   :  { %v3623_v30 = vpop.f32.mrb[20].mxu1  ;;  %v4590_v31 = vadd.f32 %v843_v22, %v811_v25 }
 0x1ef   :  { %v814_v32 = vmul.f32 0.35355338, %v3623_v30  ;;  %v702_v33 = vpop.f32.mrb[21].mxu1  ;;  %v931_v42 = vsel %vm897_vm2, %v4599_v14, -inf }
 0x1f0   :  { %v813_v35 = vmul.f32 0.35355338, %v702_v33  ;;  %v928_v36 = vsel %vm897_vm2, %v4590_v31, -inf }
 0x1f1   :  { %926 = vmax.xlane.f32.xlu1 %v925_v13  ;;  %929 = vmax.xlane.f32.xlu0 %v928_v36  ;;  %v4606_v19 = vadd.f32 %v846_v15, %v814_v32 }
 0x1f2   :  { %v3626_v16 = vpop.f32.mrb[22].mxu1  ;;  %v4604_v17 = vadd.f32 %v845_v34, %v813_v35  ;;  %v855_v35 = vld [vmem:[%s5512_s5 + $0xb0] sm:$0xff] }
 0x1f3   :  { %v712_v18 = vpop.f32.mrb[23].mxu1  ;;  %v816_v40 = vmul.f32 0.35355338, %v3626_v16  ;;  %v937_v49 = vsel %vm897_vm2, %v4606_v19, -inf }
 0x1f4   :  { %v815_v41 = vmul.f32 0.35355338, %v712_v18  ;;  %v934_v43 = vsel %vm897_vm2, %v4604_v17, -inf  ;;  %v856_v18 = vld [vmem:[%s5512_s5 + $0xb8] sm:$0xff] }
 0x1f5   :  { %932 = vmax.xlane.f32.xlu1 %v931_v42  ;;  %935 = vmax.xlane.f32.xlu0 %v934_v43  ;;  %v4627_v57 = vadd.f32 %v848_v45, %v816_v40  ;;  %v857_v43 = vld [vmem:[%s5512_s5 + $0xc0] sm:$0xff] }
 0x1f6   :  { %v3629_v46 = vpop.f32.mrb[24].mxu1  ;;  %v4618_v47 = vadd.f32 %v847_v39, %v815_v41 }
 0x1f7   :  { %v722_v48 = vpop.f32.mrb[25].mxu1  ;;  %v818_v52 = vmul.f32 0.35355338, %v3629_v46  ;;  %v943_v5 = vsel %vm897_vm2, %v4627_v57, -inf }
 0x1f8   :  { %v817_v53 = vmul.f32 0.35355338, %v722_v48  ;;  %v940_v55 = vsel %vm897_vm2, %v4618_v47, -inf }
 0x1f9   :  { %938 = vmax.xlane.f32.xlu1 %v937_v49  ;;  %941 = vmax.xlane.f32.xlu0 %v940_v55  ;;  %v4641_v7 = vadd.f32 %v850_v58, %v818_v52 }
 0x1fa   :  { %v3632_v59 = vpop.f32.mrb[26].mxu1  ;;  %v4632_v60 = vadd.f32 %v849_v50, %v817_v53  ;;  %v858_v50 = vld [vmem:[%s5512_s5 + $0xc8] sm:$0xff] }
 0x1fb   :  { %v820_v61 = vmul.f32 0.35355338, %v3632_v59  ;;  %v732_v63 = vpop.f32.mrb[27].mxu1  ;;  %v949_v25 = vsel %vm897_vm2, %v4641_v7, -inf  ;;  %v859_v59 = vld [vmem:[%s5512_s5 + $0xd0] sm:$0xff] }
 0x1fc   :  { %v819_v3 = vmul.f32 0.35355338, %v732_v63  ;;  %v946_v6 = vsel %vm897_vm2, %v4632_v60, -inf }
 0x1fd   :  { %944 = vmax.xlane.f32.xlu1 %v943_v5  ;;  %947 = vmax.xlane.f32.xlu0 %v946_v6  ;;  %v4648_v20 = vadd.f32 %v852_v8, %v820_v61  ;;  %v860_v5 = vld [vmem:[%s5512_s5 + $0xd8] sm:$0xff] }
 0x1fe   :  { %v3635_v9 = vpop.f32.mrb[28].mxu1  ;;  %v4646_v10 = vadd.f32 %v851_v0, %v819_v3 }
 0x1ff   :  { %v742_v11 = vpop.f32.mrb[29].mxu1  ;;  %v822_v22 = vmul.f32 0.35355338, %v3635_v9  ;;  %v955_v34 = vsel %vm897_vm2, %v4648_v20, -inf }
 0x200   :  { %v821_v23 = vmul.f32 0.35355338, %v742_v11  ;;  %v952_v26 = vsel %vm897_vm2, %v4646_v10, -inf }
 0x201   :  { %950 = vmax.xlane.f32.xlu1 %v949_v25  ;;  %953 = vmax.xlane.f32.xlu0 %v952_v26  ;;  %v4669_v16 = vadd.f32 %v854_v28, %v822_v22  ;;  %v862_v28 = vld [vmem:[%s5512_s5 + $0xe8] sm:$0xff] }
 0x202   :  { %v3638_v30 = vpop.f32.mrb[30].mxu1  ;;  %v4660_v32 = vadd.f32 %v853_v21, %v821_v23  ;;  %v861_v21 = vld [vmem:[%s5512_s5 + $0xe0] sm:$0xff] }
 0x203   :  { %v752_v33 = vpop.f32.mrb[31].mxu1  ;;  %v824_v13 = vmul.f32 0.35355338, %v3638_v30  ;;  %v961_v46 = vsel %vm897_vm2, %v4669_v16, -inf }
 0x204   :  { %v823_v36 = vmul.f32 0.35355338, %v752_v33  ;;  %v958_v15 = vsel %vm897_vm2, %v4660_v32, -inf }
 0x205   :  { %956 = vmax.xlane.f32.xlu1 %v955_v34  ;;  %959 = vmax.xlane.f32.xlu0 %v958_v15  ;;  %v4683_v49 = vadd.f32 %v856_v18, %v824_v13  ;;  %v864_v34 = vld [vmem:[%s5512_s5 + $0xf8] sm:$0xff] }
 0x206   :  { %v3641_v39 = vpop.f32.mrb[32].mxu1  ;;  %v4674_v40 = vadd.f32 %v855_v35, %v823_v36  ;;  %v863_v36 = vld [vmem:[%s5512_s5 + $0xf0] sm:$0xff] }
 0x207   :  { %v826_v41 = vmul.f32 0.35355338, %v3641_v39  ;;  %v762_v42 = vpop.f32.mrb[33].mxu1  ;;  %v967_v0 = vsel %vm897_vm2, %v4683_v49, -inf }
 0x208   :  { %v825_v45 = vmul.f32 0.35355338, %v762_v42  ;;  %v964_v48 = vsel %vm897_vm2, %v4674_v40, -inf }
 0x209   :  { %962 = vmax.xlane.f32.xlu1 %v961_v46  ;;  %965 = vmax.xlane.f32.xlu0 %v964_v48  ;;  %v4690_v58 = vadd.f32 %v858_v50, %v826_v41 }
 0x20a   :  { %v3644_v52 = vpop.f32.mrb[34].mxu1  ;;  %v4688_v53 = vadd.f32 %v857_v43, %v825_v45 }
 0x20b   :  { %v772_v55 = vpop.f32.mrb[35].mxu1  ;;  %v828_v61 = vmul.f32 0.35355338, %v3644_v52  ;;  %v973_v11 = vsel %vm897_vm2, %v4690_v58, -inf }
 0x20c   :  { %v827_v63 = vmul.f32 0.35355338, %v772_v55  ;;  %v970_v3 = vsel %vm897_vm2, %v4688_v53, -inf }
 0x20d   :  { %968 = vmax.xlane.f32.xlu1 %v967_v0  ;;  %971 = vmax.xlane.f32.xlu0 %v970_v3  ;;  %v4711_v26 = vadd.f32 %v860_v5, %v828_v61 }
 0x20e   :  { %v3647_v6 = vpop.f32.mrb[36].mxu1  ;;  %v4702_v8 = vadd.f32 %v859_v59, %v827_v63 }
 0x20f   :  { %v782_v9 = vpop.f32.mrb[37].mxu1  ;;  %v830_v22 = vmul.f32 0.35355338, %v3647_v6  ;;  %v979_v18 = vsel %vm897_vm2, %v4711_v26, -inf }
 0x210   :  { %v829_v23 = vmul.f32 0.35355338, %v782_v9  ;;  %v976_v25 = vsel %vm897_vm2, %v4702_v8, -inf }
 0x211   :  { %974 = vmax.xlane.f32.xlu1 %v973_v11  ;;  %977 = vmax.xlane.f32.xlu0 %v976_v25  ;;  %v4728_v41 = vadd.f32 %v862_v28, %v830_v22 }
 0x212   :  { %v3650_v30 = vpop.f32.mrb[38].mxu1  ;;  %v4716_v33 = vadd.f32 %v861_v21, %v829_v23 }
 0x213   :  { %v832_v35 = vmul.f32 0.35355338, %v3650_v30  ;;  %v792_v13 = vpop.f32.mrb[39].mxu1  ;;  %v985_v45 = vsel %vm897_vm2, %v4728_v41, -inf }
 0x214   :  { %v831_v15 = vmul.f32 0.35355338, %v792_v13  ;;  %v982_v39 = vsel %vm897_vm2, %v4716_v33, -inf }
 0x215   :  { %980 = vmax.xlane.f32.xlu1 %v979_v18  ;;  %983 = vmax.xlane.f32.xlu0 %v982_v39  ;;  %v4730_v42 = vadd.f32 %v864_v34, %v832_v35 }
 0x216   :  { %v4732_v43 = vadd.f32 %v863_v36, %v831_v15 }
 0x217   :  { %v991_v48 = vsel %vm897_vm2, %v4730_v42, -inf }
 0x218   :  { %v988_v46 = vsel %vm897_vm2, %v4732_v43, -inf }
 0x219   :  { %986 = vmax.xlane.f32.xlu1 %v985_v45  ;;  %989 = vmax.xlane.f32.xlu0 %v988_v46 }
 0x21d   :  { %992 = vmax.xlane.f32.xlu1 %v991_v48 }
 0x26a   :  { %v900_v50 = vpop.xlane.xlu0 %899 }
 0x26b   :  { %v994_v52 = vsub.f32 %v4522_v37, %v900_v50 }
 0x26d   :  { %v1026_v55 = vmul.f32 1.442695, %v994_v52 }
 0x26e   :  { %v903_v59 = vpop.xlane.xlu0 %902  ;;  %v906_v61 = vpop.xlane.xlu1 %905 }
 0x26f   :  { %3993 = vpow2.f32 %v1026_v55  ;;  %v995_v63 = vsub.f32 %v4524_v38, %v903_v59  ;;  %v996_v0 = vsub.f32 %v4534_v44, %v906_v61 }
 0x271   :  { %v1028_v3 = vmul.f32 1.442695, %v995_v63  ;;  %v1030_v5 = vmul.f32 1.442695, %v996_v0 }
 0x272   :  { %v909_v6 = vpop.xlane.xlu1 %908  ;;  %v912_v9 = vpop.xlane.xlu0 %911 }
 0x273   :  { %3995 = vpow2.f32 %v1028_v3  ;;  %v997_v11 = vsub.f32 %v4543_v51, %v909_v6  ;;  %v998_v21 = vsub.f32 %v4548_v54, %v912_v9 }
 0x274   :  { %3997 = vpow2.f32 %v1030_v5 }
 0x275   :  { %v1032_v22 = vmul.f32 1.442695, %v997_v11  ;;  %v1034_v37 = vmul.f32 1.442695, %v998_v21 }
 0x276   :  { %v915_v23 = vpop.xlane.xlu1 %914  ;;  %v918_v25 = vpop.xlane.xlu0 %917 }
 0x277   :  { %3999 = vpow2.f32 %v1032_v22  ;;  %v999_v28 = vsub.f32 %v4557_v62, %v915_v23  ;;  %v1000_v38 = vsub.f32 %v4562_v2, %v918_v25 }
 0x278   :  { %4001 = vpow2.f32 %v1034_v37 }
 0x279   :  { %v4747_v44 = vpop.eup %3993  ;;  %v1036_v30 = vmul.f32 1.442695, %v999_v28  ;;  %v1038_v34 = vmul.f32 1.442695, %v1000_v38 }
 0x27a   :  { %v921_v35 = vpop.xlane.xlu1 %920  ;;  %v924_v13 = vpop.xlane.xlu0 %923  ;;  %v1090_v51 = vsel %vm897_vm2, %v4747_v44, 0.0 }
 0x27b   :  { %4003 = vpow2.f32 %v1036_v30  ;;  %v1001_v54 = vsub.f32 %v4564_v4, %v921_v35  ;;  %v1002_v36 = vsub.f32 %v4576_v12, %v924_v13  ;;  %1091 = vadd.xlane.f32.xlu0 %v1090_v51 }
 0x27c   :  { %4005 = vpow2.f32 %v1038_v34 }
 0x27d   :  { %v4753_v62 = vpop.eup %3995  ;;  %v1040_v2 = vmul.f32 1.442695, %v1001_v54  ;;  %v1042_v15 = vmul.f32 1.442695, %v1002_v36  ;;  %v3577_v54 = vpop.f32.mrb[8].mxu0 }
 0x27e   :  { %v4755_v18 = vpop.eup %3997  ;;  %v927_v39 = vpop.xlane.xlu1 %926  ;;  %v1093_v46 = vsel %vm897_vm2, %v4753_v62, 0.0 }
 0x27f   :  { %v930_v45 = vpop.xlane.xlu0 %929  ;;  %4007 = vpow2.f32 %v1040_v2  ;;  %v1003_v48 = vsub.f32 %v4585_v27, %v927_v39  ;;  %1094 = vadd.xlane.f32.xlu1 %v1093_v46  ;;  %v1096_v12 = vsel %vm897_vm2, %v4755_v18, 0.0  ;;  %v368_v36 = vpop.f32.mrb[9].mxu0 }
 0x280   :  { %v1004_v4 = vsub.f32 %v4590_v31, %v930_v45  ;;  %4009 = vpow2.f32 %v1042_v15  ;;  %1097 = vadd.xlane.f32.xlu0 %v1096_v12  ;;  %v3863_v45 = vpack.c.bf16 %v3577_v54, %v368_v36 }
 0x281   :  { %v4763_v50 = vpop.eup %3999  ;;  %v1044_v52 = vmul.f32 1.442695, %v1003_v48 }
 0x282   :  { %v1046_v55 = vmul.f32 1.442695, %v1004_v4  ;;  %v4765_v59 = vpop.eup %4001  ;;  %v933_v61 = vpop.xlane.xlu1 %932  ;;  %v1099_v0 = vsel %vm897_vm2, %v4763_v50, 0.0  ;;  %3864 = vmatprep.subr.bf16.mxu0 %v3863_v45 }
 0x283   :  { %v936_v63 = vpop.xlane.xlu0 %935  ;;  %4011 = vpow2.f32 %v1044_v52  ;;  %v1005_v27 = vsub.f32 %v4599_v14, %v933_v61  ;;  %1100 = vadd.xlane.f32.xlu1 %v1099_v0  ;;  %v1102_v3 = vsel %vm897_vm2, %v4765_v59, 0.0  ;;  %3866 = vmatpush3.bf16.msra.mxu0 %v3863_v45 }
 0x284   :  { %v1006_v31 = vsub.f32 %v4604_v17, %v936_v63  ;;  %4013 = vpow2.f32 %v1046_v55  ;;  %1103 = vadd.xlane.f32.xlu0 %v1102_v3  ;;  %v3580_v55 = vpop.f32.mrb[10].mxu0 }
 0x285   :  { %v4773_v5 = vpop.eup %4003  ;;  %v1048_v6 = vmul.f32 1.442695, %v1005_v27  ;;  %v378_v61 = vpop.f32.mrb[11].mxu0 }
 0x286   :  { %v1050_v9 = vmul.f32 1.442695, %v1006_v31  ;;  %v4775_v11 = vpop.eup %4005  ;;  %v939_v21 = vpop.xlane.xlu1 %938  ;;  %v1105_v37 = vsel %vm897_vm2, %v4773_v5, 0.0  ;;  %v3867_v31 = vpack.c.bf16 %v3580_v55, %v378_v61 }
 0x287   :  { %v942_v22 = vpop.xlane.xlu0 %941  ;;  %4015 = vpow2.f32 %v1048_v6  ;;  %v1007_v14 = vsub.f32 %v4606_v19, %v939_v21  ;;  %1106 = vadd.xlane.f32.xlu1 %v1105_v37  ;;  %v1108_v23 = vsel %vm897_vm2, %v4775_v11, 0.0  ;;  %v3583_v37 = vpop.f32.mrb[12].mxu0 }
 0x288   :  { %v1008_v17 = vsub.f32 %v4618_v47, %v942_v22  ;;  %4017 = vpow2.f32 %v1050_v9  ;;  %1109 = vadd.xlane.f32.xlu0 %v1108_v23  ;;  %3868 = vmatprep.subr.bf16.mxu0 %v3867_v31 }
 0x289   :  { %v4783_v25 = vpop.eup %4007  ;;  %v1052_v28 = vmul.f32 1.442695, %v1007_v14  ;;  %v388_v14 = vpop.f32.mrb[13].mxu0  ;;  %3870 = vmatpush3.bf16.msra.mxu0 %v3867_v31 }
 0x28a   :  { %v1054_v38 = vmul.f32 1.442695, %v1008_v17  ;;  %v4785_v30 = vpop.eup %4009  ;;  %v945_v34 = vpop.xlane.xlu1 %944  ;;  %v1111_v13 = vsel %vm897_vm2, %v4783_v25, 0.0 }
 0x28b   :  { %v948_v35 = vpop.xlane.xlu0 %947  ;;  %4019 = vpow2.f32 %v1052_v28  ;;  %v1009_v19 = vsub.f32 %v4627_v57, %v945_v34  ;;  %1112 = vadd.xlane.f32.xlu1 %v1111_v13  ;;  %v1114_v51 = vsel %vm897_vm2, %v4785_v30, 0.0 }
 0x28c   :  { %v1010_v47 = vsub.f32 %v4632_v60, %v948_v35  ;;  %4021 = vpow2.f32 %v1054_v38  ;;  %1115 = vadd.xlane.f32.xlu0 %v1114_v51  ;;  %v3871_v38 = vpack.c.bf16 %v3583_v37, %v388_v14  ;;  %v3586_v51 = vpop.f32.mrb[14].mxu0 }
 0x28d   :  { %v4793_v2 = vpop.eup %4011  ;;  %v1056_v15 = vmul.f32 1.442695, %v1009_v19  ;;  %v398_v54 = vpop.f32.mrb[15].mxu0 }
 0x28e   :  { %v1058_v39 = vmul.f32 1.442695, %v1010_v47  ;;  %v4795_v46 = vpop.eup %4013  ;;  %v951_v48 = vpop.xlane.xlu1 %950  ;;  %v1117_v57 = vsel %vm897_vm2, %v4793_v2, 0.0  ;;  %3872 = vmatprep.subr.bf16.mxu0 %v3871_v38  ;;  %v3875_v45 = vpack.c.bf16 %v3586_v51, %v398_v54 }
 0x28f   :  { %v954_v4 = vpop.xlane.xlu0 %953  ;;  %4023 = vpow2.f32 %v1056_v15  ;;  %v1011_v60 = vsub.f32 %v4641_v7, %v951_v48  ;;  %1118 = vadd.xlane.f32.xlu1 %v1117_v57  ;;  %v1120_v52 = vsel %vm897_vm2, %v4795_v46, 0.0  ;;  %3874 = vmatpush3.bf16.msra.mxu0 %v3871_v38 }
 0x290   :  { %v1012_v12 = vsub.f32 %v4646_v10, %v954_v4  ;;  %4025 = vpow2.f32 %v1058_v39  ;;  %1121 = vadd.xlane.f32.xlu0 %v1120_v52  ;;  %3876 = vmatprep.subr.bf16.mxu0 %v3875_v45 }
 0x291   :  { %v4803_v63 = vpop.eup %4015  ;;  %v1060_v0 = vmul.f32 1.442695, %v1011_v60 }
 0x292   :  { %v1062_v27 = vmul.f32 1.442695, %v1012_v12  ;;  %v4805_v3 = vpop.eup %4017  ;;  %v957_v7 = vpop.xlane.xlu1 %956  ;;  %v1123_v10 = vsel %vm897_vm2, %v4803_v63, 0.0 }
 0x293   :  { %v960_v6 = vpop.xlane.xlu0 %959  ;;  %4027 = vpow2.f32 %v1060_v0  ;;  %v1013_v9 = vsub.f32 %v4648_v20, %v957_v7  ;;  %1124 = vadd.xlane.f32.xlu1 %v1123_v10  ;;  %v1126_v22 = vsel %vm897_vm2, %v4805_v3, 0.0  ;;  %3878 = vmatpush3.bf16.msra.mxu0 %v3875_v45 }
 0x294   :  { %v1014_v21 = vsub.f32 %v4660_v32, %v960_v6  ;;  %4029 = vpow2.f32 %v1062_v27  ;;  %1127 = vadd.xlane.f32.xlu0 %v1126_v22 }
 0x295   :  { %v4813_v17 = vpop.eup %4019  ;;  %v1064_v23 = vmul.f32 1.442695, %v1013_v9 }
 0x296   :  { %v1066_v28 = vmul.f32 1.442695, %v1014_v21  ;;  %v4815_v34 = vpop.eup %4021  ;;  %v963_v20 = vpop.xlane.xlu1 %962  ;;  %v1129_v32 = vsel %vm897_vm2, %v4813_v17, 0.0 }
 0x297   :  { %v966_v35 = vpop.xlane.xlu0 %965  ;;  %4031 = vpow2.f32 %v1064_v23  ;;  %v1015_v13 = vsub.f32 %v4669_v16, %v963_v20  ;;  %1130 = vadd.xlane.f32.xlu1 %v1129_v32  ;;  %v1132_v47 = vsel %vm897_vm2, %v4815_v34, 0.0 }
 0x298   :  { %v1016_v19 = vsub.f32 %v4674_v40, %v966_v35  ;;  %4033 = vpow2.f32 %v1066_v28  ;;  %1133 = vadd.xlane.f32.xlu0 %v1132_v47 }
 0x299   :  { %v4823_v36 = vpop.eup %4023  ;;  %v1068_v15 = vmul.f32 1.442695, %v1015_v13 }
 0x29a   :  { %v1070_v39 = vmul.f32 1.442695, %v1016_v19  ;;  %v4825_v48 = vpop.eup %4025  ;;  %v969_v16 = vpop.xlane.xlu1 %968  ;;  %v1135_v40 = vsel %vm897_vm2, %v4823_v36, 0.0 }
 0x29b   :  { %v972_v4 = vpop.xlane.xlu0 %971  ;;  %4035 = vpow2.f32 %v1068_v15  ;;  %v1017_v57 = vsub.f32 %v4683_v49, %v969_v16  ;;  %1136 = vadd.xlane.f32.xlu1 %v1135_v40  ;;  %v1138_v12 = vsel %vm897_vm2, %v4825_v48, 0.0 }
 0x29c   :  { %v1018_v60 = vsub.f32 %v4688_v53, %v972_v4  ;;  %4037 = vpow2.f32 %v1070_v39  ;;  %1139 = vadd.xlane.f32.xlu0 %v1138_v12 }
 0x29d   :  { %v4833_v52 = vpop.eup %4027  ;;  %v1072_v55 = vmul.f32 1.442695, %v1017_v57 }
 0x29e   :  { %v1074_v61 = vmul.f32 1.442695, %v1018_v60  ;;  %v4835_v0 = vpop.eup %4029  ;;  %v975_v27 = vpop.xlane.xlu1 %974  ;;  %v1141_v49 = vsel %vm897_vm2, %v4833_v52, 0.0 }
 0x29f   :  { %v978_v31 = vpop.xlane.xlu0 %977  ;;  %4039 = vpow2.f32 %v1072_v55  ;;  %v1019_v53 = vsub.f32 %v4690_v58, %v975_v27  ;;  %1142 = vadd.xlane.f32.xlu1 %v1141_v49  ;;  %v1144_v6 = vsel %vm897_vm2, %v4835_v0, 0.0 }
 0x2a0   :  { %v1020_v7 = vsub.f32 %v4702_v8, %v978_v31  ;;  %4041 = vpow2.f32 %v1074_v61  ;;  %1145 = vadd.xlane.f32.xlu0 %v1144_v6 }
 0x2a1   :  { %v4843_v10 = vpop.eup %4031  ;;  %v1076_v9 = vmul.f32 1.442695, %v1019_v53 }
 0x2a2   :  { %v1078_v21 = vmul.f32 1.442695, %v1020_v7  ;;  %v4845_v22 = vpop.eup %4033  ;;  %v981_v37 = vpop.xlane.xlu1 %980  ;;  %v1147_v23 = vsel %vm897_vm2, %v4843_v10, 0.0 }
 0x2a3   :  { %v984_v14 = vpop.xlane.xlu0 %983  ;;  %4043 = vpow2.f32 %v1076_v9  ;;  %v1021_v58 = vsub.f32 %v4711_v26, %v981_v37  ;;  %1148 = vadd.xlane.f32.xlu1 %v1147_v23  ;;  %v1150_v28 = vsel %vm897_vm2, %v4845_v22, 0.0  ;;  %v3250_v37 = vld [vmem:[%s5513_s6 + $0x20] sm:$0xff] }
 0x2a4   :  { %v1022_v8 = vsub.f32 %v4716_v33, %v984_v14  ;;  %4045 = vpow2.f32 %v1078_v21  ;;  %1151 = vadd.xlane.f32.xlu0 %v1150_v28  ;;  %v3251_v14 = vld [vmem:[%s5513_s6 + $0x28] sm:$0xff] }
 0x2a5   :  { %v4853_v38 = vpop.eup %4035  ;;  %v1080_v20 = vmul.f32 1.442695, %v1021_v58  ;;  %v3887_v23 = vpack.c.bf16 %v3251_v14, %v3250_v37 }
 0x2a6   :  { %v1082_v35 = vmul.f32 1.442695, %v1022_v8  ;;  %v4855_v32 = vpop.eup %4037  ;;  %v987_v13 = vpop.xlane.xlu1 %986  ;;  %v1153_v47 = vsel %vm897_vm2, %v4853_v38, 0.0 }
 0x2a7   :  { %v990_v19 = vpop.xlane.xlu0 %989  ;;  %4047 = vpow2.f32 %v1080_v20  ;;  %v1023_v26 = vsub.f32 %v4728_v41, %v987_v13  ;;  %1154 = vadd.xlane.f32.xlu1 %v1153_v47  ;;  %v1156_v51 = vsel %vm897_vm2, %v4855_v32, 0.0  ;;  %3888 = vmatprep.subr.bf16.mxu1 %v3887_v23 }
 0x2a8   :  { %v1024_v33 = vsub.f32 %v4732_v43, %v990_v19  ;;  %4049 = vpow2.f32 %v1082_v35  ;;  %1157 = vadd.xlane.f32.xlu0 %v1156_v51  ;;  %3890 = vmatpush3.bf16.msra.mxu1 %v3887_v23 }
 0x2a9   :  { %v4863_v54 = vpop.eup %4039  ;;  %v1084_v15 = vmul.f32 1.442695, %v1023_v26 }
 0x2aa   :  { %v1086_v39 = vmul.f32 1.442695, %v1024_v33  ;;  %v4865_v45 = vpop.eup %4041  ;;  %v993_v16 = vpop.xlane.xlu1 %992  ;;  %v1159_v4 = vsel %vm897_vm2, %v4863_v54, 0.0 }
 0x2ab   :  { %4051 = vpow2.f32 %v1084_v15  ;;  %v1025_v41 = vsub.f32 %v4730_v42, %v993_v16  ;;  %1160 = vadd.xlane.f32.xlu1 %v1159_v4  ;;  %v1162_v43 = vsel %vm897_vm2, %v4865_v45, 0.0 }
 0x2ac   :  { %4053 = vpow2.f32 %v1086_v39  ;;  %1163 = vadd.xlane.f32.xlu0 %v1162_v43 }
 0x2ad   :  { %v4872_v40 = vpop.eup %4043  ;;  %v1088_v57 = vmul.f32 1.442695, %v1025_v41 }
 0x2ae   :  { %v4874_v60 = vpop.eup %4045  ;;  %v1165_v12 = vsel %vm897_vm2, %v4872_v40, 0.0 }
 0x2af   :  { %4055 = vpow2.f32 %v1088_v57  ;;  %1166 = vadd.xlane.f32.xlu1 %v1165_v12  ;;  %v1168_v55 = vsel %vm897_vm2, %v4874_v60, 0.0 }
 0x2b0   :  { %1169 = vadd.xlane.f32.xlu0 %v1168_v55 }
 0x2b1   :  { %v4880_v42 = vpop.eup %4047 }
 0x2b2   :  { %v4882_v61 = vpop.eup %4049  ;;  %v1171_v27 = vsel %vm897_vm2, %v4880_v42, 0.0 }
 0x2b3   :  { %1172 = vadd.xlane.f32.xlu1 %v1171_v27  ;;  %v1174_v31 = vsel %vm897_vm2, %v4882_v61, 0.0 }
 0x2b4   :  { %1175 = vadd.xlane.f32.xlu0 %v1174_v31 }
 0x2b5   :  { %v4888_v49 = vpop.eup %4051 }
 0x2b6   :  { %v4890_v53 = vpop.eup %4053  ;;  %v1177_v7 = vsel %vm897_vm2, %v4888_v49, 0.0 }
 0x2b7   :  { %1178 = vadd.xlane.f32.xlu1 %v1177_v7  ;;  %v1180_v6 = vsel %vm897_vm2, %v4890_v53, 0.0 }
 0x2b8   :  { %1181 = vadd.xlane.f32.xlu0 %v1180_v6 }
 0x2b9   :  { %v4896_v9 = vpop.eup %4055 }
 0x2ba   :  { %v1183_v21 = vsel %vm897_vm2, %v4896_v9, 0.0 }
 0x2bb   :  { %1184 = vadd.xlane.f32.xlu1 %v1183_v21 }
 0x308   :  { %v1092_v58 = vpop.xlane.xlu0 %1091 }
 0x309   :  { %4057 = vrcp.f32 %v1092_v58 }
 0x30c   :  { %v1095_v8 = vpop.xlane.xlu1 %1094 }
 0x30d   :  { %4059 = vrcp.f32 %v1095_v8  ;;  %v1098_v28 = vpop.xlane.xlu0 %1097 }
 0x30e   :  { %4061 = vrcp.f32 %v1098_v28 }
 0x310   :  { %v1101_v20 = vpop.xlane.xlu1 %1100 }
 0x311   :  { %4063 = vrcp.f32 %v1101_v20  ;;  %v1104_v35 = vpop.xlane.xlu0 %1103 }
 0x312   :  { %4065 = vrcp.f32 %v1104_v35 }
 0x313   :  { %v4058_v13 = vpop.eup %4057 }
 0x314   :  { %v1218_v19 = vmul.f32 %v4058_v13, %v1092_v58  ;;  %v1107_v47 = vpop.xlane.xlu1 %1106 }
 0x315   :  { %4067 = vrcp.f32 %v1107_v47  ;;  %v1110_v26 = vpop.xlane.xlu0 %1109 }
 0x316   :  { %v1250_v33 = vsub.f32 2.0, %v1218_v19  ;;  %4069 = vrcp.f32 %v1110_v26 }
 0x317   :  { %v4060_v51 = vpop.eup %4059 }
 0x318   :  { %v4062_v15 = vpop.eup %4061  ;;  %v1282_v39 = vmul.f32 %v4058_v13, %v1250_v33  ;;  %v1219_v16 = vmul.f32 %v4060_v51, %v1095_v8  ;;  %v1113_v4 = vpop.xlane.xlu1 %1112 }
 0x319   :  { %v1220_v41 = vmul.f32 %v4062_v15, %v1098_v28  ;;  %4071 = vrcp.f32 %v1113_v4  ;;  %v1116_v43 = vpop.xlane.xlu0 %1115 }
 0x31a   :  { %v1314_v57 = vmul.f32 %v4747_v44, %v1282_v39  ;;  %v1251_v12 = vsub.f32 2.0, %v1219_v16  ;;  %4073 = vrcp.f32 %v1116_v43 }
 0x31b   :  { %v4064_v55 = vpop.eup %4063  ;;  %v1252_v27 = vsub.f32 2.0, %v1220_v41 }
 0x31c   :  { %v4066_v31 = vpop.eup %4065  ;;  %v1283_v7 = vmul.f32 %v4060_v51, %v1251_v12  ;;  %v1221_v6 = vmul.f32 %v4064_v55, %v1101_v20  ;;  %v1119_v21 = vpop.xlane.xlu1 %1118  ;;  %3667 = vmatprep.mubr.msk.f32.mxu0 %vm897_vm2, %v1314_v57 }
 0x31d   :  { %v1284_v37 = vmul.f32 %v4062_v15, %v1252_v27  ;;  %v1222_v14 = vmul.f32 %v4066_v31, %v1104_v35  ;;  %4075 = vrcp.f32 %v1119_v21  ;;  %v1122_v23 = vpop.xlane.xlu0 %1121 }
 0x31e   :  { %v1315_v58 = vmul.f32 %v4753_v62, %v1283_v7  ;;  %v1253_v8 = vsub.f32 2.0, %v1221_v6  ;;  %4077 = vrcp.f32 %v1122_v23 }
 0x31f   :  { %v4068_v28 = vpop.eup %4067  ;;  %v1316_v44 = vmul.f32 %v4755_v18, %v1284_v37  ;;  %v1254_v13 = vsub.f32 2.0, %v1222_v14 }
 0x320   :  { %v4070_v19 = vpop.eup %4069  ;;  %v1285_v33 = vmul.f32 %v4064_v55, %v1253_v8  ;;  %v1223_v39 = vmul.f32 %v4068_v28, %v1107_v47  ;;  %v1125_v51 = vpop.xlane.xlu1 %1124  ;;  %3668 = vmatmul.mubr.msk.f32.vlgmr.msra.gmra.mrb[16].mxu0 %vm897_vm2, %v1315_v58 }
 0x321   :  { %v1286_v20 = vmul.f32 %v4066_v31, %v1254_v13  ;;  %v1224_v16 = vmul.f32 %v4070_v19, %v1110_v26  ;;  %4079 = vrcp.f32 %v1125_v51  ;;  %v1128_v35 = vpop.xlane.xlu0 %1127  ;;  %3670 = vmatprep.mubr.msk.f32.mxu0 %vm897_vm2, %v1316_v44 }
 0x322   :  { %v1317_v62 = vmul.f32 %v4763_v50, %v1285_v33  ;;  %v1255_v15 = vsub.f32 2.0, %v1223_v39  ;;  %4081 = vrcp.f32 %v1128_v35 }
 0x323   :  { %v4072_v41 = vpop.eup %4071  ;;  %v1318_v18 = vmul.f32 %v4765_v59, %v1286_v20  ;;  %v1256_v57 = vsub.f32 2.0, %v1224_v16 }
 0x324   :  { %v4074_v12 = vpop.eup %4073  ;;  %v1287_v55 = vmul.f32 %v4068_v28, %v1255_v15  ;;  %v1225_v47 = vmul.f32 %v4072_v41, %v1113_v4  ;;  %v1131_v27 = vpop.xlane.xlu1 %1130  ;;  %3671 = vmatmul.mubr.msk.f32.gmra.mrb[18].mxu0 %vm897_vm2, %v1317_v62 }
 0x325   :  { %v1288_v31 = vmul.f32 %v4070_v19, %v1256_v57  ;;  %v1226_v26 = vmul.f32 %v4074_v12, %v1116_v43  ;;  %4083 = vrcp.f32 %v1131_v27  ;;  %v1134_v7 = vpop.xlane.xlu0 %1133  ;;  %3673 = vmatprep.mubr.msk.f32.mxu0 %vm897_vm2, %v1318_v18 }
 0x326   :  { %v1319_v50 = vmul.f32 %v4773_v5, %v1287_v55  ;;  %v1257_v6 = vsub.f32 2.0, %v1225_v47  ;;  %4085 = vrcp.f32 %v1134_v7 }
 0x327   :  { %v4076_v37 = vpop.eup %4075  ;;  %v1320_v59 = vmul.f32 %v4775_v11, %v1288_v31  ;;  %v1258_v14 = vsub.f32 2.0, %v1226_v26 }
 0x328   :  { %v4078_v58 = vpop.eup %4077  ;;  %v1289_v8 = vmul.f32 %v4072_v41, %v1257_v6  ;;  %v1227_v4 = vmul.f32 %v4076_v37, %v1119_v21  ;;  %v1137_v28 = vpop.xlane.xlu1 %1136  ;;  %3674 = vmatmul.mubr.msk.f32.gmra.mrb[20].mxu0 %vm897_vm2, %v1319_v50 }
 0x329   :  { %v1290_v44 = vmul.f32 %v4074_v12, %v1258_v14  ;;  %v1228_v43 = vmul.f32 %v4078_v58, %v1122_v23  ;;  %4087 = vrcp.f32 %v1137_v28  ;;  %v1140_v13 = vpop.xlane.xlu0 %1139  ;;  %3676 = vmatprep.mubr.msk.f32.mxu0 %vm897_vm2, %v1320_v59 }
 0x32a   :  { %v1321_v5 = vmul.f32 %v4783_v25, %v1289_v8  ;;  %v1259_v19 = vsub.f32 2.0, %v1227_v4  ;;  %4089 = vrcp.f32 %v1140_v13 }
 0x32b   :  { %v4080_v33 = vpop.eup %4079  ;;  %v1322_v11 = vmul.f32 %v4785_v30, %v1290_v44  ;;  %v1260_v39 = vsub.f32 2.0, %v1228_v43 }
 0x32c   :  { %v4082_v20 = vpop.eup %4081  ;;  %v1291_v16 = vmul.f32 %v4076_v37, %v1259_v19  ;;  %v1229_v21 = vmul.f32 %v4080_v33, %v1125_v51  ;;  %v1143_v62 = vpop.xlane.xlu1 %1142  ;;  %3677 = vmatmul.mubr.msk.f32.gmra.mrb[22].mxu0 %vm897_vm2, %v1321_v5 }
 0x32d   :  { %v1292_v15 = vmul.f32 %v4078_v58, %v1260_v39  ;;  %v1230_v23 = vmul.f32 %v4082_v20, %v1128_v35  ;;  %4091 = vrcp.f32 %v1143_v62  ;;  %v1146_v41 = vpop.xlane.xlu0 %1145  ;;  %3679 = vmatprep.mubr.msk.f32.mxu0 %vm897_vm2, %v1322_v11 }
 0x32e   :  { %v1323_v25 = vmul.f32 %v4793_v2, %v1291_v16  ;;  %v1261_v18 = vsub.f32 2.0, %v1229_v21  ;;  %4093 = vrcp.f32 %v1146_v41 }
 0x32f   :  { %v4084_v57 = vpop.eup %4083  ;;  %v1324_v30 = vmul.f32 %v4795_v46, %v1292_v15  ;;  %v1262_v12 = vsub.f32 2.0, %v1230_v23 }
 0x330   :  { %v4086_v55 = vpop.eup %4085  ;;  %v1293_v47 = vmul.f32 %v4080_v33, %v1261_v18  ;;  %v1231_v51 = vmul.f32 %v4084_v57, %v1131_v27  ;;  %v1149_v31 = vpop.xlane.xlu1 %1148  ;;  %3680 = vmatmul.mubr.msk.f32.gmra.mrb[24].mxu0 %vm897_vm2, %v1323_v25 }
 0x331   :  { %v1294_v26 = vmul.f32 %v4082_v20, %v1262_v12  ;;  %v1232_v35 = vmul.f32 %v4086_v55, %v1134_v7  ;;  %4095 = vrcp.f32 %v1149_v31  ;;  %v1152_v50 = vpop.xlane.xlu0 %1151  ;;  %3682 = vmatprep.mubr.msk.f32.mxu0 %vm897_vm2, %v1324_v30 }
 0x332   :  { %v1325_v2 = vmul.f32 %v4803_v63, %v1293_v47  ;;  %v1263_v6 = vsub.f32 2.0, %v1231_v51  ;;  %4097 = vrcp.f32 %v1152_v50 }
 0x333   :  { %v4088_v37 = vpop.eup %4087  ;;  %v1326_v46 = vmul.f32 %v4805_v3, %v1294_v26  ;;  %v1264_v59 = vsub.f32 2.0, %v1232_v35 }
 0x334   :  { %v4090_v14 = vpop.eup %4089  ;;  %v1295_v58 = vmul.f32 %v4084_v57, %v1263_v6  ;;  %v1233_v27 = vmul.f32 %v4088_v37, %v1137_v28  ;;  %v1155_v8 = vpop.xlane.xlu1 %1154  ;;  %3683 = vmatmul.mubr.msk.f32.gmra.mrb[26].mxu0 %vm897_vm2, %v1325_v2 }
 0x335   :  { %v1296_v4 = vmul.f32 %v4086_v55, %v1264_v59  ;;  %v1234_v7 = vmul.f32 %v4090_v14, %v1140_v13  ;;  %4099 = vrcp.f32 %v1155_v8  ;;  %v1158_v44 = vpop.xlane.xlu0 %1157  ;;  %3685 = vmatprep.mubr.msk.f32.mxu0 %vm897_vm2, %v1326_v46 }
 0x336   :  { %v1327_v63 = vmul.f32 %v4813_v17, %v1295_v58  ;;  %v1265_v43 = vsub.f32 2.0, %v1233_v27  ;;  %4101 = vrcp.f32 %v1158_v44 }
 0x337   :  { %v4092_v5 = vpop.eup %4091  ;;  %v1328_v3 = vmul.f32 %v4815_v34, %v1296_v4  ;;  %v1266_v19 = vsub.f32 2.0, %v1234_v7 }
 0x338   :  { %v4094_v33 = vpop.eup %4093  ;;  %v1297_v11 = vmul.f32 %v4088_v37, %v1265_v43  ;;  %v1235_v28 = vmul.f32 %v4092_v5, %v1143_v62  ;;  %v1161_v39 = vpop.xlane.xlu1 %1160  ;;  %3686 = vmatmul.mubr.msk.f32.gmra.mrb[28].mxu0 %vm897_vm2, %v1327_v63 }
 0x339   :  { %v1298_v20 = vmul.f32 %v4090_v14, %v1266_v19  ;;  %v1236_v13 = vmul.f32 %v4094_v33, %v1146_v41  ;;  %4103 = vrcp.f32 %v1161_v39  ;;  %v1164_v16 = vpop.xlane.xlu0 %1163  ;;  %3688 = vmatprep.mubr.msk.f32.mxu0 %vm897_vm2, %v1328_v3 }
 0x33a   :  { %v1329_v17 = vmul.f32 %v4823_v36, %v1297_v11  ;;  %v1267_v21 = vsub.f32 2.0, %v1235_v28  ;;  %4105 = vrcp.f32 %v1164_v16 }
 0x33b   :  { %v4096_v15 = vpop.eup %4095  ;;  %v1330_v34 = vmul.f32 %v4825_v48, %v1298_v20  ;;  %v1268_v23 = vsub.f32 2.0, %v1236_v13 }
 0x33c   :  { %v4098_v25 = vpop.eup %4097  ;;  %v1299_v18 = vmul.f32 %v4092_v5, %v1267_v21  ;;  %v1237_v62 = vmul.f32 %v4096_v15, %v1149_v31  ;;  %v1167_v57 = vpop.xlane.xlu1 %1166  ;;  %3689 = vmatmul.mubr.msk.f32.gmra.mrb[30].mxu0 %vm897_vm2, %v1329_v17 }
 0x33d   :  { %v1300_v30 = vmul.f32 %v4094_v33, %v1268_v23  ;;  %v1238_v41 = vmul.f32 %v4098_v25, %v1152_v50  ;;  %4107 = vrcp.f32 %v1167_v57  ;;  %v1170_v12 = vpop.xlane.xlu0 %1169  ;;  %3691 = vmatprep.mubr.msk.f32.mxu0 %vm897_vm2, %v1330_v34 }
 0x33e   :  { %v1331_v36 = vmul.f32 %v4833_v52, %v1299_v18  ;;  %v1269_v55 = vsub.f32 2.0, %v1237_v62  ;;  %4109 = vrcp.f32 %v1170_v12 }
 0x33f   :  { %v4100_v47 = vpop.eup %4099  ;;  %v1332_v48 = vmul.f32 %v4835_v0, %v1300_v30  ;;  %v1270_v51 = vsub.f32 2.0, %v1238_v41 }
 0x340   :  { %v4102_v26 = vpop.eup %4101  ;;  %v1301_v35 = vmul.f32 %v4096_v15, %v1269_v55  ;;  %v1239_v31 = vmul.f32 %v4100_v47, %v1155_v8  ;;  %v1173_v2 = vpop.xlane.xlu1 %1172  ;;  %3692 = vmatmul.mubr.msk.f32.gmra.mrb[32].mxu0 %vm897_vm2, %v1331_v36 }
 0x341   :  { %v1302_v6 = vmul.f32 %v4098_v25, %v1270_v51  ;;  %v1240_v50 = vmul.f32 %v4102_v26, %v1158_v44  ;;  %4111 = vrcp.f32 %v1173_v2  ;;  %v1176_v37 = vpop.xlane.xlu0 %1175  ;;  %3694 = vmatprep.mubr.msk.f32.mxu0 %vm897_vm2, %v1332_v48 }
 0x342   :  { %v1333_v52 = vmul.f32 %v4843_v10, %v1301_v35  ;;  %v1271_v46 = vsub.f32 2.0, %v1239_v31  ;;  %4113 = vrcp.f32 %v1176_v37 }
 0x343   :  { %v4104_v59 = vpop.eup %4103  ;;  %v1334_v0 = vmul.f32 %v4845_v22, %v1302_v6  ;;  %v1272_v14 = vsub.f32 2.0, %v1240_v50 }
 0x344   :  { %v4106_v58 = vpop.eup %4105  ;;  %v1303_v27 = vmul.f32 %v4100_v47, %v1271_v46  ;;  %v1241_v8 = vmul.f32 %v4104_v59, %v1161_v39  ;;  %v1179_v4 = vpop.xlane.xlu1 %1178  ;;  %3695 = vmatmul.mubr.msk.f32.gmra.mrb[34].mxu0 %vm897_vm2, %v1333_v52 }
 0x345   :  { %v1304_v7 = vmul.f32 %v4102_v26, %v1272_v14  ;;  %v1242_v44 = vmul.f32 %v4106_v58, %v1164_v16  ;;  %4115 = vrcp.f32 %v1179_v4  ;;  %v1182_v63 = vpop.xlane.xlu0 %1181  ;;  %3697 = vmatprep.mubr.msk.f32.mxu0 %vm897_vm2, %v1334_v0  ;;  %v1734_v0 = vld [vmem:[%s5513_s6 + $0x18] sm:$0xff] }
 0x346   :  { %v1335_v10 = vmul.f32 %v4853_v38, %v1303_v27  ;;  %v1273_v43 = vsub.f32 2.0, %v1241_v8  ;;  %4117 = vrcp.f32 %v1182_v63  ;;  %v3281_v27 = vld [vmem:[%s5513_s6 + $0x48] sm:$0xff] }
 0x347   :  { %v4108_v5 = vpop.eup %4107  ;;  %v1336_v22 = vmul.f32 %v4855_v32, %v1304_v7  ;;  %v1274_v3 = vsub.f32 2.0, %v1242_v44 }
 0x348   :  { %v4110_v19 = vpop.eup %4109  ;;  %v1305_v33 = vmul.f32 %v4104_v59, %v1273_v43  ;;  %v1243_v11 = vmul.f32 %v4108_v5, %v1167_v57  ;;  %v1185_v28 = vpop.xlane.xlu1 %1184  ;;  %3698 = vmatmul.mubr.msk.f32.gmra.mrb[36].mxu0 %vm897_vm2, %v1335_v10  ;;  %v1733_v59 = vld [vmem:[%s5513_s6 + $0x10] sm:$0xff] }
 0x349   :  { %v1306_v39 = vmul.f32 %v4106_v58, %v1274_v3  ;;  %v1244_v20 = vmul.f32 %v4110_v19, %v1170_v12  ;;  %4119 = vrcp.f32 %v1185_v28  ;;  %3700 = vmatprep.mubr.msk.f32.mxu0 %vm897_vm2, %v1336_v22  ;;  %v3883_v14 = vpack.c.bf16 %v1734_v0, %v1733_v59  ;;  %v3280_v58 = vld [vmem:[%s5513_s6 + $0x40] sm:$0xff] }
 0x34a   :  { %v1337_v13 = vmul.f32 %v4863_v54, %v1305_v33  ;;  %v1275_v38 = vsub.f32 2.0, %v1243_v11  ;;  %v4994_v8 = vpack.c.bf16 %v3281_v27, %v3280_v58 }
 0x34b   :  { %v4112_v16 = vpop.eup %4111  ;;  %v1338_v17 = vmul.f32 %v4865_v45, %v1306_v39  ;;  %v1276_v21 = vsub.f32 2.0, %v1244_v20 }
 0x34c   :  { %v4114_v32 = vpop.eup %4113  ;;  %v1307_v15 = vmul.f32 %v4108_v5, %v1275_v38  ;;  %v1245_v34 = vmul.f32 %v4112_v16, %v1173_v2  ;;  %3701 = vmatmul.mubr.msk.f32.gmra.mrb[38].mxu0 %vm897_vm2, %v1337_v13 }
 0x34d   :  { %v1308_v23 = vmul.f32 %v4110_v19, %v1276_v21  ;;  %v1246_v25 = vmul.f32 %v4114_v32, %v1176_v37  ;;  %3703 = vmatprep.mubr.msk.f32.mxu0 %vm897_vm2, %v1338_v17 }
 0x34e   :  { %v1339_v18 = vmul.f32 %v4872_v40, %v1307_v15  ;;  %v1277_v62 = vsub.f32 2.0, %v1245_v34 }
 0x34f   :  { %v4116_v57 = vpop.eup %4115  ;;  %v1340_v54 = vmul.f32 %v4874_v60, %v1308_v23  ;;  %v1278_v30 = vsub.f32 2.0, %v1246_v25 }
 0x350   :  { %v4118_v41 = vpop.eup %4117  ;;  %v1309_v12 = vmul.f32 %v4112_v16, %v1277_v62  ;;  %v1247_v45 = vmul.f32 %v4116_v57, %v1179_v4  ;;  %3704 = vmatmul.mubr.msk.f32.gmra.mrb[40].mxu0 %vm897_vm2, %v1339_v18 }
 0x351   :  { %v1310_v36 = vmul.f32 %v4114_v32, %v1278_v30  ;;  %v1248_v55 = vmul.f32 %v4118_v41, %v1182_v63  ;;  %3706 = vmatprep.mubr.msk.f32.mxu0 %vm897_vm2, %v1340_v54 }
 0x352   :  { %v1341_v47 = vmul.f32 %v4880_v42, %v1309_v12  ;;  %v1279_v48 = vsub.f32 2.0, %v1247_v45 }
 0x353   :  { %v4120_v51 = vpop.eup %4119  ;;  %v1342_v40 = vmul.f32 %v4882_v61, %v1310_v36  ;;  %v1280_v26 = vsub.f32 2.0, %v1248_v55  ;;  %v1731_v61 = vld [vmem:[%s5513_s6] sm:$0xff] }
 0x354   :  { %v1311_v35 = vmul.f32 %v4116_v57, %v1279_v48  ;;  %v1249_v31 = vmul.f32 %v4120_v51, %v1185_v28  ;;  %3707 = vmatmul.mubr.msk.f32.gmra.mrb[42].mxu0 %vm897_vm2, %v1341_v47 }
 0x355   :  { %v1312_v60 = vmul.f32 %v4118_v41, %v1280_v26  ;;  %3709 = vmatprep.mubr.msk.f32.mxu0 %vm897_vm2, %v1342_v40 }
 0x356   :  { %v1343_v2 = vmul.f32 %v4888_v49, %v1311_v35  ;;  %v1281_v6 = vsub.f32 2.0, %v1249_v31  ;;  %v1732_v49 = vld [vmem:[%s5513_s6 + $0x8] sm:$0xff] }
 0x357   :  { %v1344_v50 = vmul.f32 %v4890_v53, %v1312_v60  ;;  %v3879_v52 = vpack.c.bf16 %v1732_v49, %v1731_v61  ;;  %v3252_v53 = vld [vmem:[%s5513_s6 + $0x30] sm:$0xff] }
 0x358   :  { %v1313_v37 = vmul.f32 %v4120_v51, %v1281_v6  ;;  %3710 = vmatmul.mubr.msk.f32.gmra.mrb[44].mxu0 %vm897_vm2, %v1343_v2 }
 0x359   :  { %3712 = vmatprep.mubr.msk.f32.mxu0 %vm897_vm2, %v1344_v50  ;;  %3880 = vmatprep.subr.bf16.mxu0 %v3879_v52 }
 0x35a   :  { %v1345_v42 = vmul.f32 %v4896_v9, %v1313_v37  ;;  %3882 = vmatpush3.bf16.msra.mxu0 %v3879_v52  ;;  %v3253_v9 = vld [vmem:[%s5513_s6 + $0x38] sm:$0xff] }
 0x35b   :  { %v3891_v46 = vpack.c.bf16 %v3253_v9, %v3252_v53  ;;  %3884 = vmatprep.subr.bf16.mxu0 %v3883_v14 }
 0x35c   :  { %3713 = vmatmul.mubr.msk.f32.gmra.mrb[46].mxu0 %vm897_vm2, %v1345_v42 }
 0x35d   :  { %3892 = vmatprep.subr.bf16.mxu1 %v3891_v46 }
 0x35e   :  { %3894 = vmatpush3.bf16.msra.mxu1 %v3891_v46  ;;  %3886 = vmatpush3.bf16.msra.mxu0 %v3883_v14 }
 0x35f   :  { %3928 = vmatprep.subr.bf16.mxu1 %v4994_v8 }
 0x3f3   :  { %v3669_v4 = vpop.f32.mrb[16].mxu0 }
 0x3f4   :  { %v1508_v7 = vpop.f32.mrb[17].mxu0  ;;  %v1668_v19 = vmul.f32 %v3669_v4, %v4352_v29 }
 0x3f5   :  { %v1667_v28 = vmul.f32 %v1508_v7, %v4352_v29 }
 0x3f7   :  { %v3672_v44 = vpop.f32.mrb[18].mxu0 }
 0x3f8   :  { %v1518_v63 = vpop.f32.mrb[19].mxu0  ;;  %v1670_v16 = vmul.f32 %v3672_v44, %v4352_v29 }
 0x3f9   :  { %v1669_v32 = vmul.f32 %v1518_v63, %v4352_v29 }
 0x3fb   :  { %v3675_v10 = vpop.f32.mrb[20].mxu0 }
 0x3fc   :  { %v1528_v43 = vpop.f32.mrb[21].mxu0  ;;  %v1672_v18 = vmul.f32 %v3675_v10, %v4352_v29 }
 0x3fd   :  { %v1671_v54 = vmul.f32 %v1528_v43, %v4352_v29 }
 0x3ff   :  { %v3678_v5 = vpop.f32.mrb[22].mxu0 }
 0x400   :  { %v1538_v22 = vpop.f32.mrb[23].mxu0  ;;  %v1674_v36 = vmul.f32 %v3678_v5, %v4352_v29 }
 0x401   :  { %v1673_v48 = vmul.f32 %v1538_v22, %v4352_v29  ;;  %v3282_v22 = vld [vmem:[%s5513_s6 + $0x50] sm:$0xff] }
 0x403   :  { %v3681_v3 = vpop.f32.mrb[24].mxu0 }
 0x404   :  { %v1684_v33 = vmul.f32 %v3681_v3, %v4407_v56  ;;  %v1548_v11 = vpop.f32.mrb[25].mxu0  ;;  %v3283_v3 = vld [vmem:[%s5513_s6 + $0x58] sm:$0xff] }
 0x405   :  { %v1683_v39 = vmul.f32 %v1548_v11, %v4407_v56 }
 0x406   :  { %v1692_v20 = vadd.f32 %v1684_v33, %v1668_v19 }
 0x407   :  { %v1691_v13 = vadd.f32 %v1683_v39, %v1667_v28  ;;  %v3684_v38 = vpop.f32.mrb[26].mxu0  ;;  %v3931_v39 = vpack.c.bf16 %v3283_v3, %v3282_v22 }
 0x408   :  { %v1686_v17 = vmul.f32 %v3684_v38, %v4407_v56  ;;  %v1558_v21 = vpop.f32.mrb[27].mxu0  ;;  %v3310_v38 = vld [vmem:[%s5513_s6 + $0x68] sm:$0xff] }
 0x409   :  { %v1685_v15 = vmul.f32 %v1558_v21, %v4407_v56 }
 0x40a   :  { %v1694_v34 = vadd.f32 %v1686_v17, %v1670_v16 }
 0x40b   :  { %v1693_v23 = vadd.f32 %v1685_v15, %v1669_v32  ;;  %v3687_v25 = vpop.f32.mrb[28].mxu0 }
 0x40c   :  { %v1688_v62 = vmul.f32 %v3687_v25, %v4407_v56  ;;  %v1568_v57 = vpop.f32.mrb[29].mxu0 }
 0x40d   :  { %v1687_v30 = vmul.f32 %v1568_v57, %v4407_v56 }
 0x40e   :  { %v1696_v41 = vadd.f32 %v1688_v62, %v1672_v18 }
 0x40f   :  { %v1695_v12 = vadd.f32 %v1687_v30, %v1671_v54  ;;  %v3690_v45 = vpop.f32.mrb[30].mxu0 }
 0x410   :  { %v1690_v55 = vmul.f32 %v3690_v45, %v4407_v56  ;;  %v1578_v47 = vpop.f32.mrb[31].mxu0 }
 0x411   :  { %v1689_v51 = vmul.f32 %v1578_v47, %v4407_v56  ;;  %v3262_v47 = vld [vmem:[%s5514_s7 + $0x80] sm:$0xff] }
 0x412   :  { %v1698_v40 = vadd.f32 %v1690_v55, %v1674_v36  ;;  %v3263_v36 = vld [vmem:[%s5514_s7 + $0x88] sm:$0xff]  ;;  %v3265_v55 = vld [vmem:[%s5514_s7 + $0x98] sm:$0xff] }
 0x413   :  { %v1697_v26 = vadd.f32 %v1689_v51, %v1673_v48  ;;  %v3693_v35 = vpop.f32.mrb[32].mxu0  ;;  %v3895_v48 = vpack.c.bf16 %v3265_v55, %v3263_v36  ;;  %v3264_v51 = vld [vmem:[%s5514_s7 + $0x90] sm:$0xff] }
 0x414   :  { %v1700_v31 = vmul.f32 %v3693_v35, %v4433_v1  ;;  %v1588_v60 = vpop.f32.mrb[33].mxu0  ;;  %v3897_v35 = vpack.c.bf16 %v3264_v51, %v3262_v47  ;;  %v1868_v47 = vld [vmem:[%s5514_s7 + $0x20] sm:$0xff] }
 0x415   :  { %v1699_v2 = vmul.f32 %v1588_v60, %v4433_v1  ;;  %v3266_v60 = vld [vmem:[%s5514_s7 + $0xa0] sm:$0xff]  ;;  %3896 = vmatprep.subr.bf16.mxu0 %v3895_v48  ;;  %v1870_v48 = vld [vmem:[%s5514_s7 + $0x30] sm:$0xff] }
 0x416   :  { %v1708_v6 = vadd.f32 %v1700_v31, %v1692_v20 }
 0x417   :  { %v1707_v50 = vadd.f32 %v1699_v2, %v1691_v13  ;;  %v3696_v37 = vpop.f32.mrb[34].mxu0  ;;  %v3309_v13 = vld [vmem:[%s5513_s6 + $0x60] sm:$0xff]  ;;  %v3268_v2 = vld [vmem:[%s5514_s7 + $0xb0] sm:$0xff] }
 0x418   :  { %v1702_v42 = vmul.f32 %v3696_v37, %v4433_v1  ;;  %v1598_v61 = vpop.f32.mrb[35].mxu0  ;;  %v3901_v37 = vpack.c.bf16 %v3268_v2, %v3266_v60  ;;  %v1872_v60 = vld [vmem:[%s5514_s7 + $0x40] sm:$0xff]  ;;  %v1874_v2 = vld [vmem:[%s5514_s7 + $0x50] sm:$0xff] }
 0x419   :  { %v1701_v49 = vmul.f32 %v1598_v61, %v4433_v1  ;;  %v3270_v61 = vld [vmem:[%s5514_s7 + $0xc0] sm:$0xff] }
 0x41a   :  { %v1710_v52 = vadd.f32 %v1702_v42, %v1694_v34  ;;  %v3951_v34 = vpack.c.bf16 %v3310_v38, %v3309_v13 }
 0x41b   :  { %v1709_v29 = vadd.f32 %v1701_v49, %v1693_v23  ;;  %v3699_v53 = vpop.f32.mrb[36].mxu0  ;;  %v3272_v49 = vld [vmem:[%s5514_s7 + $0xd0] sm:$0xff] }
 0x41c   :  { %v1704_v56 = vmul.f32 %v3699_v53, %v4433_v1  ;;  %v1608_v9 = vpop.f32.mrb[37].mxu0  ;;  %v3905_v53 = vpack.c.bf16 %v3272_v49, %v3270_v61  ;;  %v1876_v61 = vld [vmem:[%s5514_s7 + $0x60] sm:$0xff]  ;;  %v1878_v49 = vld [vmem:[%s5514_s7 + $0x70] sm:$0xff] }
 0x41d   :  { %v1703_v46 = vmul.f32 %v1608_v9, %v4433_v1  ;;  %v3274_v9 = vld [vmem:[%s5514_s7 + $0xe0] sm:$0xff] }
 0x41e   :  { %v1712_v59 = vadd.f32 %v1704_v56, %v1696_v41 }
 0x41f   :  { %v1711_v0 = vadd.f32 %v1703_v46, %v1695_v12  ;;  %v3702_v14 = vpop.f32.mrb[38].mxu0  ;;  %v3311_v12 = vld [vmem:[%s5513_s6 + $0x70] sm:$0xff] }
 0x420   :  { %v1706_v58 = vmul.f32 %v3702_v14, %v4433_v1  ;;  %v1618_v27 = vpop.f32.mrb[39].mxu0  ;;  %v3276_v46 = vld [vmem:[%s5514_s7 + $0xf0] sm:$0xff] }
 0x421   :  { %v1705_v4 = vmul.f32 %v1618_v27, %v4433_v1  ;;  %v3909_v14 = vpack.c.bf16 %v3276_v46, %v3274_v9  ;;  %v3292_v9 = vld [vmem:[%s5514_s7 + $0x100] sm:$0xff]  ;;  %v3294_v46 = vld [vmem:[%s5514_s7 + $0x110] sm:$0xff] }
 0x422   :  { %v1714_v7 = vadd.f32 %v1706_v58, %v1698_v40  ;;  %v3267_v40 = vld [vmem:[%s5514_s7 + $0xa8] sm:$0xff] }
 0x423   :  { %v1713_v44 = vadd.f32 %v1705_v4, %v1697_v26  ;;  %v3705_v63 = vpop.f32.mrb[40].mxu0  ;;  %v3269_v26 = vld [vmem:[%s5514_s7 + $0xb8] sm:$0xff] }
 0x424   :  { %v1716_v10 = vmul.f32 %v3705_v63, %v4342_v24  ;;  %v1628_v43 = vpop.f32.mrb[41].mxu0  ;;  %v3899_v31 = vpack.c.bf16 %v3269_v26, %v3267_v40  ;;  %v4161_v63 = vmov 0.0   ;;  %v1873_v40 = vld [vmem:[%s5514_s7 + $0x48] sm:$0xff]  ;;  %v1875_v26 = vld [vmem:[%s5514_s7 + $0x58] sm:$0xff] }
 0x425   :  { %v1715_v5 = vmul.f32 %v1628_v43, %v4342_v24 }
 0x426   :  { %v1724_v19 = vadd.f32 %v1716_v10, %v1708_v6  ;;  %v3271_v6 = vld [vmem:[%s5514_s7 + $0xc8] sm:$0xff] }
 0x427   :  { %v1723_v33 = vadd.f32 %v1715_v5, %v1707_v50  ;;  %v3708_v11 = vpop.f32.mrb[42].mxu0  ;;  %v3273_v50 = vld [vmem:[%s5514_s7 + $0xd8] sm:$0xff] }
 0x428   :  { %v1718_v1 = vmul.f32 %v3708_v11, %v4342_v24  ;;  %v1638_v28 = vpop.f32.mrb[43].mxu0  ;;  %v3903_v42 = vpack.c.bf16 %v3273_v50, %v3271_v6  ;;  %v1877_v6 = vld [vmem:[%s5514_s7 + $0x68] sm:$0xff]  ;;  %v1879_v50 = vld [vmem:[%s5514_s7 + $0x78] sm:$0xff] }
 0x429   :  { %v1717_v20 = vmul.f32 %v1638_v28, %v4342_v24  ;;  %3723 = vmatprep.mubr.msk.f32.mxu0 %vm59_vm0, %v1723_v33  ;;  %3743 = vmatprep.mubr.msk.f32.mxu1 %vm59_vm0, %v1723_v33 }
 0x42a   :  { %v1726_v16 = vadd.f32 %v1718_v1, %v1710_v52  ;;  %3724 = vmatmul.mubr.msk.f32.vlgmr.msra.gmra.mrb[48].mxu0 %vm59_vm0, %v1724_v19  ;;  %3744 = vmatmul.mubr.msk.f32.vlgmr.msra.gmra.mrb[40].mxu1 %vm59_vm0, %v1724_v19  ;;  %v3275_v52 = vld [vmem:[%s5514_s7 + $0xe8] sm:$0xff] }
 0x42b   :  { %v1725_v17 = vadd.f32 %v1717_v20, %v1709_v29  ;;  %v3711_v21 = vpop.f32.mrb[44].mxu0  ;;  %3930 = vmatpush3.bf16.msra.mxu1 %v4994_v8  ;;  %3898 = vmatpush1.bf16.msra.mxu0 %v3897_v35  ;;  %v3277_v29 = vld [vmem:[%s5514_s7 + $0xf8] sm:$0xff]  ;;  %v3917_v35 = vpack.c.bf16 %v1870_v48, %v1868_v47  ;;  %v3335_v47 = vld [vmem:[%s5514_s7 + $0x1f0] sm:$0xff] }
 0x42c   :  { %v1720_v32 = vmul.f32 %v3711_v21, %v4342_v24  ;;  %v1648_v15 = vpop.f32.mrb[45].mxu0  ;;  %3932 = vmatprep.subr.bf16.mxu1 %v3931_v39  ;;  %3900 = vmatprep.subr.bf16.mxu0 %v3899_v31  ;;  %v3907_v56 = vpack.c.bf16 %v3277_v29, %v3275_v52  ;;  %v3919_v31 = vpack.c.bf16 %v1875_v26, %v1873_v40  ;;  %v3293_v52 = vld [vmem:[%s5514_s7 + $0x108] sm:$0xff]  ;;  %v3295_v29 = vld [vmem:[%s5514_s7 + $0x118] sm:$0xff] }
 0x42d   :  { %v1719_v23 = vmul.f32 %v1648_v15, %v4342_v24  ;;  %3726 = vmatprep.mubr.msk.f32.mxu0 %vm59_vm0, %v1725_v17  ;;  %3746 = vmatprep.mubr.msk.f32.mxu1 %vm59_vm0, %v1725_v17 }
 0x42e   :  { %v1728_v25 = vadd.f32 %v1720_v32, %v1712_v59  ;;  %3727 = vmatmul.mubr.msk.f32.gmra.mrb[50].mxu0 %vm59_vm0, %v1726_v16  ;;  %3747 = vmatmul.mubr.msk.f32.gmra.mrb[42].mxu1 %vm59_vm0, %v1726_v16  ;;  %v1865_v59 = vld [vmem:[%s5514_s7 + $0x8] sm:$0xff] }
 0x42f   :  { %v1727_v18 = vadd.f32 %v1719_v23, %v1711_v0  ;;  %v3714_v62 = vpop.f32.mrb[46].mxu0  ;;  %3934 = vmatpush3.bf16.msra.mxu1 %v3931_v39  ;;  %3902 = vmatpush1.bf16.msra.mxu0 %v3901_v37  ;;  %v1867_v0 = vld [vmem:[%s5514_s7 + $0x18] sm:$0xff]  ;;  %v3921_v37 = vpack.c.bf16 %v1874_v2, %v1872_v60 }
 0x430   :  { %v1722_v8 = vmul.f32 %v3714_v62, %v4342_v24  ;;  %v1658_v57 = vpop.f32.mrb[47].mxu0  ;;  %3952 = vmatprep.subr.bf16.mxu1 %v3951_v34  ;;  %3904 = vmatprep.subr.bf16.mxu0 %v3903_v42  ;;  %v3911_v58 = vpack.c.bf16 %v1867_v0, %v1865_v59  ;;  %v3923_v42 = vpack.c.bf16 %v1879_v50, %v1877_v6  ;;  %v3297_v59 = vld [vmem:[%s5514_s7 + $0x128] sm:$0xff]  ;;  %v3299_v0 = vld [vmem:[%s5514_s7 + $0x138] sm:$0xff]  ;;  %v4154_v50 = vld [vmem:[%s5508_s0 + $0x10] sm:$0xff] }
 0x431   :  { %v1721_v54 = vmul.f32 %v1658_v57, %v4342_v24  ;;  %3729 = vmatprep.mubr.msk.f32.mxu0 %vm59_vm0, %v1727_v18  ;;  %3749 = vmatprep.mubr.msk.f32.mxu1 %vm59_vm0, %v1727_v18  ;;  %v3312_v24 = vld [vmem:[%s5513_s6 + $0x78] sm:$0xff] }
 0x432   :  { %v1730_v30 = vadd.f32 %v1722_v8, %v1714_v7  ;;  %3730 = vmatmul.mubr.msk.f32.gmra.mrb[52].mxu0 %vm59_vm0, %v1728_v25  ;;  %3750 = vmatmul.mubr.msk.f32.gmra.mrb[44].mxu1 %vm59_vm0, %v1728_v25  ;;  %v3955_v45 = vpack.c.bf16 %v3312_v24, %v3311_v12  ;;  %v1866_v12 = vld [vmem:[%s5514_s7 + $0x10] sm:$0xff]  ;;  %v1869_v24 = vld [vmem:[%s5514_s7 + $0x28] sm:$0xff] }
 0x433   :  { %v1729_v41 = vadd.f32 %v1721_v54, %v1713_v44  ;;  %3906 = vmatpush1.bf16.msra.mxu0 %v3905_v53  ;;  %v3925_v53 = vpack.c.bf16 %v1878_v49, %v1876_v61 }
 0x434   :  { %3908 = vmatprep.subr.bf16.mxu0 %v3907_v56  ;;  %v3935_v56 = vpack.c.bf16 %v3295_v29, %v3293_v52 }
 0x435   :  { %3732 = vmatprep.mubr.msk.f32.mxu0 %vm59_vm0, %v1729_v41  ;;  %3752 = vmatprep.mubr.msk.f32.mxu1 %vm59_vm0, %v1729_v41 }
 0x436   :  { %3733 = vmatmul.mubr.msk.f32.gmra.mrb[54].mxu0 %vm59_vm0, %v1730_v30  ;;  %3753 = vmatmul.mubr.msk.f32.gmra.mrb[46].mxu1 %vm59_vm0, %v1730_v30 }
 0x437   :  { %3763 = vmatprep.mubr.msk.f32.mxu1 %vm59_vm0, %v1723_v33  ;;  %3910 = vmatpush1.bf16.msra.mxu0 %v3909_v14 }
 0x438   :  { %3912 = vmatprep.subr.bf16.mxu0 %v3911_v58  ;;  %2106 = vmatprep.mubr.f32.mxu0 %v4161_v63  ;;  %v3937_v58 = vpack.c.bf16 %v3294_v46, %v3292_v9  ;;  %v4157_v46 = vld [vmem:[%s5508_s0 + $0x20] sm:$0xff] }
 0x43a   :  { %3764 = vmatmul.mubr.msk.f32.vlgmr.msra.gmra.mrb[48].mxu1 %vm59_vm0, %v1724_v19 }
 0x43b   :  { %3766 = vmatprep.mubr.msk.f32.mxu1 %vm59_vm0, %v1725_v17  ;;  %3954 = vmatpush3.bf16.msra.mxu1 %v3951_v34 }
 0x43c   :  { %3956 = vmatprep.subr.bf16.mxu1 %v3955_v45 }
 0x43e   :  { %3767 = vmatmul.mubr.msk.f32.gmra.mrb[50].mxu1 %vm59_vm0, %v1726_v16 }
 0x43f   :  { %3769 = vmatprep.mubr.msk.f32.mxu1 %vm59_vm0, %v1727_v18  ;;  %3958 = vmatpush3.bf16.msra.mxu1 %v3955_v45  ;;  %v1871_v45 = vld [vmem:[%s5514_s7 + $0x38] sm:$0xff] }
 0x440   :  { %v3915_v55 = vpack.c.bf16 %v1871_v45, %v1869_v24  ;;  %v3334_v24 = vld [vmem:[%s5514_s7 + $0x1e8] sm:$0xff]  ;;  %v3336_v45 = vld [vmem:[%s5514_s7 + $0x1f8] sm:$0xff] }
 0x442   :  { %3770 = vmatmul.mubr.msk.f32.gmra.mrb[52].mxu1 %vm59_vm0, %v1728_v25 }
 0x443   :  { %3772 = vmatprep.mubr.msk.f32.mxu1 %vm59_vm0, %v1729_v41 }
 0x446   :  { %3773 = vmatmul.mubr.msk.f32.gmra.mrb[54].mxu1 %vm59_vm0, %v1730_v30 }
 0x447   :  { %3783 = vmatprep.mubr.msk.f32.mxu1 %vm59_vm0, %v1723_v33 }
 0x44a   :  { %3784 = vmatmul.mubr.msk.f32.vlgmr.msra.gmra.mrb[56].mxu1 %vm59_vm0, %v1724_v19 }
 0x44b   :  { %3786 = vmatprep.mubr.msk.f32.mxu1 %vm59_vm0, %v1725_v17 }
 0x44e   :  { %3787 = vmatmul.mubr.msk.f32.gmra.mrb[58].mxu1 %vm59_vm0, %v1726_v16 }
 0x44f   :  { %3789 = vmatprep.mubr.msk.f32.mxu1 %vm59_vm0, %v1727_v18 }
 0x452   :  { %3790 = vmatmul.mubr.msk.f32.gmra.mrb[60].mxu1 %vm59_vm0, %v1728_v25 }
 0x453   :  { %3792 = vmatprep.mubr.msk.f32.mxu1 %vm59_vm0, %v1729_v41  ;;  %v1864_v41 = vld [vmem:[%s5514_s7] sm:$0xff] }
 0x454   :  { %v3913_v36 = vpack.c.bf16 %v1866_v12, %v1864_v41  ;;  %v3329_v41 = vld [vmem:[%s5514_s7 + $0x1c0] sm:$0xff]  ;;  %v3331_v12 = vld [vmem:[%s5514_s7 + $0x1d0] sm:$0xff] }
 0x456   :  { %3793 = vmatmul.mubr.msk.f32.gmra.mrb[62].mxu1 %vm59_vm0, %v1730_v30 }
 0x4fd   :  { %v3725_v27 = vpop.f32.mrb[48].mxu0  ;;  %v3745_v4 = vpop.f32.mrb[40].mxu1 }
 0x4fe   :  { %v1825_v7 = vpop.f32.mrb[49].mxu0  ;;  %v1951_v44 = vpop.f32.mrb[41].mxu1 }
 0x4ff   :  { %2007 = vxpose.xlu0.b32.start [1/8] (short) (narrow) %v1951_v44, 8  ;;  %2113 = vxpose.xlu1.b32.start [1/8] (short) (narrow) %v1825_v7, 8  ;;  %v3298_v7 = vld [vmem:[%s5514_s7 + $0x130] sm:$0xff]  ;;  %v3301_v44 = vld [vmem:[%s5514_s7 + $0x148] sm:$0xff] }
 0x501   :  { %v3728_v10 = vpop.f32.mrb[50].mxu0  ;;  %v3748_v43 = vpop.f32.mrb[42].mxu1 }
 0x502   :  { %v1835_v5 = vpop.f32.mrb[51].mxu0  ;;  %v1961_v22 = vpop.f32.mrb[43].mxu1 }
 0x503   :  { %2008 = vxpose.xlu0.b32.cont [2/8] (short) (narrow) %v3745_v4, 8  ;;  %2114 = vxpose.xlu1.b32.cont [2/8] (short) (narrow) %v3725_v27, 8  ;;  %v3939_v27 = vpack.c.bf16 %v3299_v0, %v3297_v59  ;;  %v3296_v4 = vld [vmem:[%s5514_s7 + $0x120] sm:$0xff] }
 0x505   :  { %v3731_v3 = vpop.f32.mrb[52].mxu0  ;;  %v3751_v19 = vpop.f32.mrb[44].mxu1 }
 0x506   :  { %v1845_v33 = vpop.f32.mrb[53].mxu0  ;;  %v1971_v11 = vpop.f32.mrb[45].mxu1 }
 0x507   :  { %2009 = vxpose.xlu0.b32.cont [3/8] (short) (narrow) %v1961_v22, 8  ;;  %2115 = vxpose.xlu1.b32.cont [3/8] (short) (narrow) %v1835_v5, 8  ;;  %v3300_v22 = vld [vmem:[%s5514_s7 + $0x140] sm:$0xff] }
 0x509   :  { %v3734_v1 = vpop.f32.mrb[54].mxu0  ;;  %v3754_v28 = vpop.f32.mrb[46].mxu1 }
 0x50a   :  { %v1855_v39 = vpop.f32.mrb[55].mxu0  ;;  %v1981_v20 = vpop.f32.mrb[47].mxu1 }
 0x50b   :  { %2010 = vxpose.xlu0.b32.cont [4/8] (short) (narrow) %v3748_v43, 8  ;;  %2116 = vxpose.xlu1.b32.cont [4/8] (short) (narrow) %v3728_v10, 8  ;;  %v3303_v10 = vld [vmem:[%s5514_s7 + $0x158] sm:$0xff]  ;;  %v3941_v43 = vpack.c.bf16 %v3298_v7, %v3296_v4  ;;  %v4159_v4 = vld [vmem:[%s5508_s0 + $0x30] sm:$0xff] }
 0x50c   :  { %v3943_v5 = vpack.c.bf16 %v3303_v10, %v3301_v44 }
 0x50d   :  { %v3765_v13 = vpop.f32.mrb[48].mxu1 }
 0x50e   :  { %v2290_v38 = vpop.f32.mrb[49].mxu1 }
 0x50f   :  { %2011 = vxpose.xlu0.b32.cont [5/8] (short) (narrow) %v1971_v11, 8  ;;  %2117 = vxpose.xlu1.b32.cont [5/8] (short) (narrow) %v1845_v33, 8  ;;  %v3307_v33 = vld [vmem:[%s5514_s7 + $0x178] sm:$0xff] }
 0x511   :  { %v3768_v16 = vpop.f32.mrb[50].mxu1 }
 0x512   :  { %v2300_v17 = vpop.f32.mrb[51].mxu1 }
 0x513   :  { %2012 = vxpose.xlu0.b32.cont [6/8] (short) (narrow) %v3751_v19, 8  ;;  %2118 = vxpose.xlu1.b32.cont [6/8] (short) (narrow) %v3731_v3, 8  ;;  %v3302_v3 = vld [vmem:[%s5514_s7 + $0x150] sm:$0xff]  ;;  %v3305_v19 = vld [vmem:[%s5514_s7 + $0x168] sm:$0xff] }
 0x514   :  { %v3945_v11 = vpack.c.bf16 %v3302_v3, %v3300_v22 }
 0x515   :  { %v3771_v21 = vpop.f32.mrb[52].mxu1 }
 0x516   :  { %v2310_v32 = vpop.f32.mrb[53].mxu1 }
 0x517   :  { %2013 = vxpose.xlu0.b32.cont [7/8] (short) (narrow) %v1981_v20, 8  ;;  %2119 = vxpose.xlu1.b32.cont [7/8] (short) (narrow) %v1855_v39, 8  ;;  %v3306_v39 = vld [vmem:[%s5514_s7 + $0x170] sm:$0xff]  ;;  %v3322_v20 = vld [vmem:[%s5514_s7 + $0x188] sm:$0xff] }
 0x519   :  { %v3774_v15 = vpop.f32.mrb[54].mxu1 }
 0x51a   :  { %v2320_v34 = vpop.f32.mrb[55].mxu1 }
 0x51b   :  { %2014 = vxpose.xlu0.b32.end [8/8] (short) (narrow) %v3754_v28, 8  ;;  %2120 = vxpose.xlu1.b32.end [8/8] (short) (narrow) %v3734_v1, 8  ;;  %v3947_v1 = vpack.c.bf16 %v3307_v33, %v3305_v19  ;;  %v3304_v28 = vld [vmem:[%s5514_s7 + $0x160] sm:$0xff] }
 0x51d   :  { %v3785_v23 = vpop.f32.mrb[56].mxu1 }
 0x51e   :  { %v2525_v25 = vpop.f32.mrb[57].mxu1 }
 0x51f   :  { %2346 = vxpose.xlu0.b32.start [1/8] (short) (narrow) %v2290_v38, 8  ;;  %2581 = vxpose.xlu1.b32.start [1/8] (short) (narrow) %v2525_v25, 8  ;;  %v3949_v38 = vpack.c.bf16 %v3306_v39, %v3304_v28  ;;  %v3325_v25 = vld [vmem:[%s5514_s7 + $0x1a0] sm:$0xff] }
 0x521   :  { %v3788_v18 = vpop.f32.mrb[58].mxu1 }
 0x522   :  { %v2535_v62 = vpop.f32.mrb[59].mxu1 }
 0x523   :  { %2347 = vxpose.xlu0.b32.cont [2/8] (short) (narrow) %v3765_v13, 8  ;;  %2582 = vxpose.xlu1.b32.cont [2/8] (short) (narrow) %v3785_v23, 8  ;;  %v3324_v13 = vld [vmem:[%s5514_s7 + $0x198] sm:$0xff] }
 0x525   :  { %v3791_v8 = vpop.f32.mrb[60].mxu1 }
 0x526   :  { %v2545_v57 = vpop.f32.mrb[61].mxu1 }
 0x527   :  { %2348 = vxpose.xlu0.b32.cont [3/8] (short) (narrow) %v2300_v17, 8  ;;  %2583 = vxpose.xlu1.b32.cont [3/8] (short) (narrow) %v2535_v62, 8  ;;  %v3321_v17 = vld [vmem:[%s5514_s7 + $0x180] sm:$0xff] }
 0x529   :  { %v3794_v54 = vpop.f32.mrb[62].mxu1 }
 0x52a   :  { %v2555_v30 = vpop.f32.mrb[63].mxu1 }
 0x52b   :  { %2349 = vxpose.xlu0.b32.cont [4/8] (short) (narrow) %v3768_v16, 8  ;;  %2584 = vxpose.xlu1.b32.cont [4/8] (short) (narrow) %v3788_v18, 8  ;;  %v3959_v16 = vpack.c.bf16 %v3324_v13, %v3322_v20  ;;  %v3327_v18 = vld [vmem:[%s5514_s7 + $0x1b0] sm:$0xff] }
 0x52f   :  { %2350 = vxpose.xlu0.b32.cont [5/8] (short) (narrow) %v2310_v32, 8  ;;  %2585 = vxpose.xlu1.b32.cont [5/8] (short) (narrow) %v2545_v57, 8  ;;  %v3326_v32 = vld [vmem:[%s5514_s7 + $0x1a8] sm:$0xff]  ;;  %v3332_v57 = vld [vmem:[%s5514_s7 + $0x1d8] sm:$0xff] }
 0x533   :  { %2351 = vxpose.xlu0.b32.cont [6/8] (short) (narrow) %v3771_v21, 8  ;;  %2586 = vxpose.xlu1.b32.cont [6/8] (short) (narrow) %v3791_v8, 8  ;;  %v3323_v21 = vld [vmem:[%s5514_s7 + $0x190] sm:$0xff]  ;;  %v3330_v8 = vld [vmem:[%s5514_s7 + $0x1c8] sm:$0xff] }
 0x537   :  { %2352 = vxpose.xlu0.b32.cont [7/8] (short) (narrow) %v2320_v34, 8  ;;  %2587 = vxpose.xlu1.b32.cont [7/8] (short) (narrow) %v2555_v30, 8  ;;  %v3961_v34 = vpack.c.bf16 %v3323_v21, %v3321_v17  ;;  %v3967_v30 = vpack.c.bf16 %v3332_v57, %v3330_v8 }
 0x53b   :  { %2353 = vxpose.xlu0.b32.end [8/8] (short) (narrow) %v3774_v15, 8  ;;  %2588 = vxpose.xlu1.b32.end [8/8] (short) (narrow) %v3794_v54, 8  ;;  %v3328_v15 = vld [vmem:[%s5514_s7 + $0x1b8] sm:$0xff]  ;;  %v3965_v54 = vpack.c.bf16 %v3327_v18, %v3325_v25 }
 0x53c   :  { %v3963_v23 = vpack.c.bf16 %v3328_v15, %v3326_v32 }
 0x57f   :  { %v2023_v51 = vpop.trf.xlu0  ;;  %v2129_v14 = vpop.trf.xlu1 }
 0x580   :  { %3278 = vmatmul.mubr.msk.f32.vlgmr.msra.gmra.mrb[56].mxu0 %vm897_vm2, %v2023_v51 }
 0x581   :  { %3914 = vmatpush1.bf16.msra.mxu0 %v3913_v36  ;;  %2212 = vmatprep.mubr.f32.mxu0 %v4161_v63  ;;  %v3971_v36 = vpack.c.bf16 %v3336_v45, %v3334_v24 }
 0x582   :  { %3916 = vmatprep.subr.bf16.mxu0 %v3915_v55  ;;  %v3333_v55 = vld [vmem:[%s5514_s7 + $0x1e0] sm:$0xff] }
 0x583   :  { %v3973_v48 = vpack.c.bf16 %v3335_v47, %v3333_v55 }
 0x585   :  { %3918 = vmatpush1.bf16.msra.mxu0 %v3917_v35  ;;  %v4153_v35 = vld [vmem:[%s5508_s0] sm:$0xff] }
 0x586   :  { %3920 = vmatprep.subr.bf16.mxu0 %v3919_v31 }
 0x589   :  { %3922 = vmatpush1.bf16.msra.mxu0 %v3921_v37 }
 0x58a   :  { %3924 = vmatprep.subr.bf16.mxu0 %v3923_v42  ;;  %v4155_v42 = vld [vmem:[%s5508_s0 + $0x8] sm:$0xff] }
 0x58d   :  { %3926 = vmatpush1.bf16.msra.mxu0 %v3925_v53  ;;  %v4156_v53 = vld [vmem:[%s5508_s0 + $0x18] sm:$0xff] }
 0x58e   :  { %3936 = vmatprep.subr.bf16.mxu0 %v3935_v56 }
 0x590   :  { %3279 = vmatmul.mubr.msk.f32.vlgmr.msra.gmra.mrb[56].mxu0 %vm897_vm2, %v2129_v14 }
 0x591   :  { %3938 = vmatpush1.bf16.msra.mxu0 %v3937_v58  ;;  %2445 = vmatprep.mubr.f32.mxu0 %v4161_v63  ;;  %v4158_v58 = vld [vmem:[%s5508_s0 + $0x28] sm:$0xff] }
 0x592   :  { %3940 = vmatprep.subr.bf16.mxu0 %v3939_v27 }
 0x595   :  { %3942 = vmatpush1.bf16.msra.mxu0 %v3941_v43 }
 0x596   :  { %3944 = vmatprep.subr.bf16.mxu0 %v3943_v5  ;;  %v4160_v5 = vld [vmem:[%s5508_s0 + $0x38] sm:$0xff] }
 0x599   :  { %3946 = vmatpush1.bf16.msra.mxu0 %v3945_v11 }
 0x59a   :  { %3948 = vmatprep.subr.bf16.mxu0 %v3947_v1 }
 0x59d   :  { %3950 = vmatpush1.bf16.msra.mxu0 %v3949_v38 }
 0x59e   :  { %3960 = vmatprep.subr.bf16.mxu0 %v3959_v16 }
 0x59f   :  { %v2362_v62 = vpop.trf.xlu0  ;;  %v2597_v51 = vpop.trf.xlu1 }
 0x5a0   :  { %3308 = vmatmul.mubr.msk.f32.vlgmr.msra.gmra.mrb[56].mxu0 %vm897_vm2, %v2362_v62 }
 0x5a1   :  { %3962 = vmatpush1.bf16.msra.mxu0 %v3961_v34  ;;  %2680 = vmatprep.mubr.f32.mxu0 %v4161_v63  ;;  %v3969_v63 = vpack.c.bf16 %v3331_v12, %v3329_v41 }
 0x5a2   :  { %3964 = vmatprep.subr.bf16.mxu0 %v3963_v23 }
 0x5a5   :  { %3966 = vmatpush1.bf16.msra.mxu0 %v3965_v54 }
 0x5a6   :  { %3968 = vmatprep.subr.bf16.mxu0 %v3967_v30 }
 0x5a9   :  { %3970 = vmatpush1.bf16.msra.mxu0 %v3969_v63 }
 0x5aa   :  { %3972 = vmatprep.subr.bf16.mxu0 %v3971_v36 }
 0x5ad   :  { %3974 = vmatpush1.bf16.msra.mxu0 %v3973_v48 }
 0x5b0   :  { %3337 = vmatmul.mubr.msk.f32.vlgmr.msra.gmra.mrb[56].mxu0 %vm897_vm2, %v2597_v51 }
 0x683   :  { %v2682_v40 = vpop.f32.mrb[56].mxu0 }
 0x684   :  { %2693 = vrot.lane.b32.xlu1 %v2682_v40, %s4162_s2  ;;  %2690 = vrot.lane.b32.xlu0 %v2682_v40, %s4163_s27  ;;  %v2684_v26 = vpop.f32.mrb[57].mxu0  ;;  %v2709_v31 = vadd.f32 %v4153_v35, %v2682_v40 }
 0x685   :  { %v2713_v59 = vadd.f32 %v4157_v46, %v2684_v26 }
 0x686   :  { %v2717_v60 = vsel %vm59_vm0, %v2709_v31, 0.0 }
 0x687   :  { %v2729_v10 = vsel %vm59_vm0, %v2713_v59, 0.0 }
 0x688   :  { %2696 = vrot.lane.b32.xlu1 %v2682_v40, %s4164_s4  ;;  %2703 = vrot.lane.b32.xlu0 %v2684_v26, %s4162_s2 }
 0x68c   :  { %2700 = vrot.lane.b32.xlu1 %v2684_v26, %s4163_s27 }
 0x690   :  { %2706 = vrot.lane.b32.xlu1 %v2684_v26, %s4164_s4 }
 0x6a7   :  { %2718 = vadd.xlane.f32.xlu0 %v2717_v60 }
 0x6f6   :  { %v2694_v2 = vpop.permute.xlu1 %2693  ;;  %v2691_v6 = vpop.permute.xlu0 %2690 }
 0x6f7   :  { %v2711_v37 = vadd.f32 %v4154_v50, %v2694_v2  ;;  %v2710_v61 = vadd.f32 %v4155_v42, %v2691_v6  ;;  %v2853_v42 = vld [vmem:[%s5515_s10 + $0x8] sm:$0xff] }
 0x6f9   :  { %v2723_v49 = vsel %vm59_vm0, %v2711_v37, 0.0  ;;  %v2720_v52 = vsel %vm59_vm0, %v2710_v61, 0.0 }
 0x6fa   :  { %v2697_v29 = vpop.permute.xlu1 %2696  ;;  %2724 = vadd.xlane.f32.xlu0 %v2723_v49  ;;  %2721 = vadd.xlane.f32.xlu1 %v2720_v52  ;;  %v2704_v0 = vpop.permute.xlu0 %2703  ;;  %v2854_v49 = vld [vmem:[%s5515_s10 + $0x10] sm:$0xff]  ;;  %v2855_v52 = vld [vmem:[%s5515_s10 + $0x18] sm:$0xff] }
 0x6fb   :  { %v2712_v56 = vadd.f32 %v4156_v53, %v2697_v29  ;;  %v2715_v7 = vadd.f32 %v4159_v4, %v2704_v0  ;;  %v3979_v29 = vpack.c.bf16 %v2855_v52, %v2854_v49 }
 0x6fd   :  { %v2726_v9 = vsel %vm59_vm0, %v2712_v56, 0.0  ;;  %v2735_v19 = vsel %vm59_vm0, %v2715_v7, 0.0 }
 0x6fe   :  { %2727 = vadd.xlane.f32.xlu0 %v2726_v9  ;;  %v2701_v14 = vpop.permute.xlu1 %2700 }
 0x6ff   :  { %v2714_v27 = vadd.f32 %v4158_v58, %v2701_v14  ;;  %v5373_v14 = vld [vmem:[%s5517_s9] ss:$0 sm:$0xff] }
 0x701   :  { %v2732_v44 = vsel %vm59_vm0, %v2714_v27, 0.0 }
 0x702   :  { %2733 = vadd.xlane.f32.xlu1 %v2732_v44  ;;  %v2707_v43 = vpop.permute.xlu1 %2706  ;;  %2730 = vadd.xlane.f32.xlu0 %v2729_v10 }
 0x703   :  { %v2716_v22 = vadd.f32 %v4160_v5, %v2707_v43 }
 0x705   :  { %v2738_v3 = vsel %vm59_vm0, %v2716_v22, 0.0 }
 0x706   :  { %2739 = vadd.xlane.f32.xlu1 %v2738_v3  ;;  %2736 = vadd.xlane.f32.xlu0 %v2735_v19 }
 0x734   :  { %v2719_v33 = vpop.xlane.xlu0 %2718 }
 0x735   :  { %v2742_v11 = vmul.f32 0.03125, %v2719_v33 }
 0x737   :  { %v5312_v1 = vsub.f32 %v2709_v31, %v2742_v11 }
 0x739   :  { %v2758_v28 = vmul.f32 %v5312_v1, %v5312_v1 }
 0x73b   :  { %v2766_v39 = vsel %vm59_vm0, %v2758_v28, 0.0 }
 0x73c   :  { %2767 = vadd.xlane.f32.xlu0 %v2766_v39 }
 0x787   :  { %v2725_v20 = vpop.xlane.xlu0 %2724  ;;  %v2722_v13 = vpop.xlane.xlu1 %2721 }
 0x788   :  { %v2744_v38 = vmul.f32 0.03125, %v2725_v20  ;;  %v2743_v16 = vmul.f32 0.03125, %v2722_v13 }
 0x78a   :  { %v5317_v17 = vsub.f32 %v2711_v37, %v2744_v38  ;;  %v5319_v21 = vsub.f32 %v2710_v61, %v2743_v16  ;;  %v2852_v37 = vld [vmem:[%s5515_s10] sm:$0xff] }
 0x78b   :  { %v2728_v32 = vpop.xlane.xlu0 %2727  ;;  %v3975_v61 = vpack.c.bf16 %v2853_v42, %v2852_v37 }
 0x78c   :  { %v2745_v15 = vmul.f32 0.03125, %v2728_v32  ;;  %v2759_v34 = vmul.f32 %v5319_v21, %v5319_v21  ;;  %v2760_v23 = vmul.f32 %v5317_v17, %v5317_v17 }
 0x78d   :  { %3976 = vmatprep.subr.bf16.mxu1 %v3975_v61 }
 0x78e   :  { %v5325_v25 = vsub.f32 %v2712_v56, %v2745_v15  ;;  %v2769_v18 = vsel %vm59_vm0, %v2759_v34, 0.0  ;;  %v2772_v62 = vsel %vm59_vm0, %v2760_v23, 0.0  ;;  %3978 = vmatpush3.bf16.msra.mxu1 %v3975_v61 }
 0x78f   :  { %2770 = vadd.xlane.f32.xlu1 %v2769_v18  ;;  %v2734_v8 = vpop.xlane.xlu1 %2733  ;;  %2773 = vadd.xlane.f32.xlu0 %v2772_v62  ;;  %v2731_v57 = vpop.xlane.xlu0 %2730 }
 0x790   :  { %v2747_v54 = vmul.f32 0.03125, %v2734_v8  ;;  %v2746_v30 = vmul.f32 0.03125, %v2731_v57  ;;  %v2761_v41 = vmul.f32 %v5325_v25, %v5325_v25  ;;  %3980 = vmatprep.subr.bf16.mxu1 %v3979_v29 }
 0x792   :  { %v5331_v12 = vsub.f32 %v2714_v27, %v2747_v54  ;;  %v5333_v24 = vsub.f32 %v2713_v59, %v2746_v30  ;;  %v2775_v45 = vsel %vm59_vm0, %v2761_v41, 0.0  ;;  %3982 = vmatpush3.bf16.msra.mxu1 %v3979_v29  ;;  %v5367_v59 = vld [vmem:[%s5516_s8] ss:$0 sm:$0xff] }
 0x793   :  { %2776 = vadd.xlane.f32.xlu1 %v2775_v45  ;;  %v2740_v63 = vpop.xlane.xlu1 %2739  ;;  %v2737_v36 = vpop.xlane.xlu0 %2736 }
 0x794   :  { %v2749_v55 = vmul.f32 0.03125, %v2740_v63  ;;  %v2748_v47 = vmul.f32 0.03125, %v2737_v36  ;;  %v2763_v48 = vmul.f32 %v5331_v12, %v5331_v12  ;;  %v2762_v51 = vmul.f32 %v5333_v24, %v5333_v24 }
 0x796   :  { %v5340_v40 = vsub.f32 %v2716_v22, %v2749_v55  ;;  %v5342_v26 = vsub.f32 %v2715_v7, %v2748_v47  ;;  %v2781_v35 = vsel %vm59_vm0, %v2763_v48, 0.0  ;;  %v2778_v31 = vsel %vm59_vm0, %v2762_v51, 0.0 }
 0x797   :  { %2782 = vadd.xlane.f32.xlu1 %v2781_v35  ;;  %2779 = vadd.xlane.f32.xlu0 %v2778_v31 }
 0x798   :  { %v2765_v60 = vmul.f32 %v5340_v40, %v5340_v40  ;;  %v2764_v2 = vmul.f32 %v5342_v26, %v5342_v26 }
 0x79a   :  { %v2787_v6 = vsel %vm59_vm0, %v2765_v60, 0.0  ;;  %v2784_v50 = vsel %vm59_vm0, %v2764_v2, 0.0 }
 0x79b   :  { %2788 = vadd.xlane.f32.xlu1 %v2787_v6  ;;  %2785 = vadd.xlane.f32.xlu0 %v2784_v50 }
 0x7c9   :  { %v2768_v53 = vpop.xlane.xlu0 %2767 }
 0x7ca   :  { %v2790_v56 = vmul.f32 0.03125, %v2768_v53 }
 0x7cc   :  { %v2798_v9 = vadd.f32 1e-05, %v2790_v56 }
 0x7ce   :  { %4121 = vrsqrt.f32 %v2798_v9 }
 0x7d8   :  { %v4122_v46 = vpop.eup %4121 }
 0x7d9   :  { %v2814_v0 = vmul.f32 %v4122_v46, %v5312_v1 }
 0x7db   :  { %v2829_v58 = vmul.f32 %v5367_v59, %v2814_v0 }
 0x7dd   :  { %v5377_v27 = vadd.f32 %v5373_v14, %v2829_v58 }
 0x7df   :  { %3803 = vmatprep.mubr.msk.f32.mxu1 %vm59_vm0, %v5377_v27 }
 0x81c   :  { %v2771_v4 = vpop.xlane.xlu1 %2770  ;;  %v2774_v7 = vpop.xlane.xlu0 %2773 }
 0x81d   :  { %v2791_v44 = vmul.f32 0.03125, %v2771_v4  ;;  %v2792_v10 = vmul.f32 0.03125, %v2774_v7 }
 0x81f   :  { %v2799_v43 = vadd.f32 1e-05, %v2791_v44  ;;  %v2800_v5 = vadd.f32 1e-05, %v2792_v10 }
 0x820   :  { %v2777_v22 = vpop.xlane.xlu1 %2776 }
 0x821   :  { %4123 = vrsqrt.f32 %v2799_v43  ;;  %v2793_v3 = vmul.f32 0.03125, %v2777_v22 }
 0x822   :  { %4125 = vrsqrt.f32 %v2800_v5 }
 0x823   :  { %v2801_v19 = vadd.f32 1e-05, %v2793_v3 }
 0x824   :  { %v2783_v33 = vpop.xlane.xlu1 %2782  ;;  %v2780_v11 = vpop.xlane.xlu0 %2779 }
 0x825   :  { %4127 = vrsqrt.f32 %v2801_v19  ;;  %v2795_v1 = vmul.f32 0.03125, %v2783_v33  ;;  %v2794_v28 = vmul.f32 0.03125, %v2780_v11 }
 0x827   :  { %v2803_v39 = vadd.f32 1e-05, %v2795_v1  ;;  %v2802_v20 = vadd.f32 1e-05, %v2794_v28 }
 0x828   :  { %v2789_v13 = vpop.xlane.xlu1 %2788  ;;  %v2786_v38 = vpop.xlane.xlu0 %2785 }
 0x829   :  { %4129 = vrsqrt.f32 %v2803_v39  ;;  %v2797_v16 = vmul.f32 0.03125, %v2789_v13  ;;  %v2796_v32 = vmul.f32 0.03125, %v2786_v38 }
 0x82a   :  { %4131 = vrsqrt.f32 %v2802_v20 }
 0x82b   :  { %v4124_v15 = vpop.eup %4123  ;;  %v2805_v34 = vadd.f32 1e-05, %v2797_v16  ;;  %v2804_v23 = vadd.f32 1e-05, %v2796_v32 }
 0x82c   :  { %v4126_v18 = vpop.eup %4125  ;;  %v2815_v62 = vmul.f32 %v4124_v15, %v5319_v21 }
 0x82d   :  { %4133 = vrsqrt.f32 %v2805_v34  ;;  %v2816_v8 = vmul.f32 %v4126_v18, %v5317_v17 }
 0x82e   :  { %v2830_v57 = vmul.f32 %v5367_v59, %v2815_v62  ;;  %4135 = vrsqrt.f32 %v2804_v23 }
 0x82f   :  { %v4128_v54 = vpop.eup %4127  ;;  %v2831_v30 = vmul.f32 %v5367_v59, %v2816_v8 }
 0x830   :  { %v2845_v41 = vadd.f32 %v5373_v14, %v2830_v57  ;;  %v2817_v45 = vmul.f32 %v4128_v54, %v5325_v25 }
 0x831   :  { %v2846_v63 = vadd.f32 %v5373_v14, %v2831_v30 }
 0x832   :  { %3804 = vmatmul.mubr.msk.f32.vlgmr.msra.gmra.mrb[64].mxu1 %vm59_vm0, %v2845_v41  ;;  %v2832_v36 = vmul.f32 %v5367_v59, %v2817_v45 }
 0x833   :  { %v4130_v21 = vpop.eup %4129  ;;  %3806 = vmatprep.mubr.msk.f32.mxu1 %vm59_vm0, %v2846_v63 }
 0x834   :  { %v4132_v17 = vpop.eup %4131  ;;  %v2847_v55 = vadd.f32 %v5373_v14, %v2832_v36  ;;  %v2819_v47 = vmul.f32 %v4130_v21, %v5331_v12 }
 0x835   :  { %v2818_v48 = vmul.f32 %v4132_v17, %v5333_v24 }
 0x836   :  { %3807 = vmatmul.mubr.msk.f32.gmra.mrb[66].mxu1 %vm59_vm0, %v2847_v55  ;;  %v2834_v25 = vmul.f32 %v5367_v59, %v2819_v47 }
 0x837   :  { %v4134_v51 = vpop.eup %4133  ;;  %v2833_v35 = vmul.f32 %v5367_v59, %v2818_v48 }
 0x838   :  { %v4136_v31 = vpop.eup %4135  ;;  %v2849_v60 = vadd.f32 %v5373_v14, %v2834_v25  ;;  %v2821_v2 = vmul.f32 %v4134_v51, %v5340_v40  ;;  %v3340_v40 = vld [vmem:[%s5518_s11] ss:$0 sm:$0xff] }
 0x839   :  { %v2848_v6 = vadd.f32 %v5373_v14, %v2833_v35  ;;  %v2820_v50 = vmul.f32 %v4136_v31, %v5342_v26 }
 0x83a   :  { %v2836_v12 = vmul.f32 %v5367_v59, %v2821_v2 }
 0x83b   :  { %3809 = vmatprep.mubr.msk.f32.mxu1 %vm59_vm0, %v2848_v6  ;;  %v2835_v24 = vmul.f32 %v5367_v59, %v2820_v50 }
 0x83c   :  { %3810 = vmatmul.mubr.msk.f32.gmra.mrb[68].mxu1 %vm59_vm0, %v2849_v60  ;;  %v2851_v37 = vadd.f32 %v5373_v14, %v2836_v12 }
 0x83d   :  { %v2850_v42 = vadd.f32 %v5373_v14, %v2835_v24 }
 0x83f   :  { %3812 = vmatprep.mubr.msk.f32.mxu1 %vm59_vm0, %v2850_v42 }
 0x840   :  { %3813 = vmatmul.mubr.msk.f32.gmra.mrb[70].mxu1 %vm59_vm0, %v2851_v37 }
 0x905   :  { %v3805_v26 = vpop.f32.mrb[64].mxu1 }
 0x906   :  { %v2959_v61 = vadd.f32 %v3805_v26, %v3340_v40  ;;  %v2953_v49 = vpop.f32.mrb[65].mxu1 }
 0x907   :  { %v2954_v52 = vadd.f32 %v3340_v40, %v2953_v49 }
 0x908   :  { %v2993_v29 = vadd.f32 %v2959_v61, %v2845_v41 }
 0x909   :  { %v3808_v53 = vpop.f32.mrb[66].mxu1  ;;  %v2992_v56 = vadd.f32 %v2954_v52, %v5377_v27 }
 0x90a   :  { %v2969_v9 = vadd.f32 %v3808_v53, %v3340_v40  ;;  %v2963_v46 = vpop.f32.mrb[67].mxu1  ;;  %v3003_v59 = vsel %vm59_vm0, %v2993_v29, 0.0 }
 0x90b   :  { %v2964_v0 = vadd.f32 %v3340_v40, %v2963_v46  ;;  %3004 = vadd.xlane.f32.xlu1 %v3003_v59  ;;  %v3000_v14 = vsel %vm59_vm0, %v2992_v56, 0.0 }
 0x90c   :  { %3001 = vadd.xlane.f32.xlu0 %v3000_v14  ;;  %v2995_v58 = vadd.f32 %v2969_v9, %v2847_v55 }
 0x90d   :  { %v2994_v4 = vadd.f32 %v2964_v0, %v2846_v63 }
 0x90e   :  { %v3009_v7 = vsel %vm59_vm0, %v2995_v58, 0.0 }
 0x90f   :  { %v3811_v44 = vpop.f32.mrb[68].mxu1  ;;  %3010 = vadd.xlane.f32.xlu1 %v3009_v7  ;;  %v3006_v10 = vsel %vm59_vm0, %v2994_v4, 0.0 }
 0x910   :  { %v2979_v43 = vadd.f32 %v3811_v44, %v3340_v40  ;;  %v2973_v5 = vpop.f32.mrb[69].mxu1  ;;  %3007 = vadd.xlane.f32.xlu0 %v3006_v10 }
 0x911   :  { %v2974_v27 = vadd.f32 %v3340_v40, %v2973_v5 }
 0x912   :  { %v2997_v22 = vadd.f32 %v2979_v43, %v2849_v60 }
 0x913   :  { %v3814_v3 = vpop.f32.mrb[70].mxu1  ;;  %v2996_v19 = vadd.f32 %v2974_v27, %v2848_v6 }
 0x914   :  { %v2989_v33 = vadd.f32 %v3814_v3, %v3340_v40  ;;  %v2983_v11 = vpop.f32.mrb[71].mxu1  ;;  %v3015_v1 = vsel %vm59_vm0, %v2997_v22, 0.0 }
 0x915   :  { %v2984_v28 = vadd.f32 %v3340_v40, %v2983_v11  ;;  %3016 = vadd.xlane.f32.xlu1 %v3015_v1  ;;  %v3012_v39 = vsel %vm59_vm0, %v2996_v19, 0.0 }
 0x916   :  { %3013 = vadd.xlane.f32.xlu0 %v3012_v39  ;;  %v2999_v20 = vadd.f32 %v2989_v33, %v2851_v37 }
 0x917   :  { %v2998_v13 = vadd.f32 %v2984_v28, %v2850_v42 }
 0x918   :  { %v3021_v38 = vsel %vm59_vm0, %v2999_v20, 0.0 }
 0x919   :  { %3022 = vadd.xlane.f32.xlu1 %v3021_v38  ;;  %v3018_v16 = vsel %vm59_vm0, %v2998_v13, 0.0 }
 0x91a   :  { %3019 = vadd.xlane.f32.xlu0 %v3018_v16 }
 0x998   :  { %v3005_v32 = vpop.xlane.xlu1 %3004 }
 0x999   :  { %v3025_v15 = vmul.f32 0.03125, %v3005_v32  ;;  %v3002_v34 = vpop.xlane.xlu0 %3001 }
 0x99a   :  { %v3024_v23 = vmul.f32 0.03125, %v3002_v34  ;;  %v3350_v34 = vld [vmem:[%s5520_s13] ss:$0 sm:$0xff] }
 0x99b   :  { %v5421_v18 = vsub.f32 %v2993_v29, %v3025_v15 }
 0x99c   :  { %v5423_v62 = vsub.f32 %v2992_v56, %v3024_v23  ;;  %v3011_v8 = vpop.xlane.xlu1 %3010 }
 0x99d   :  { %v3027_v57 = vmul.f32 0.03125, %v3011_v8  ;;  %v3008_v54 = vpop.xlane.xlu0 %3007  ;;  %v3041_v30 = vmul.f32 %v5421_v18, %v5421_v18 }
 0x99e   :  { %v3026_v41 = vmul.f32 0.03125, %v3008_v54  ;;  %v3040_v45 = vmul.f32 %v5423_v62, %v5423_v62 }
 0x99f   :  { %v5429_v63 = vsub.f32 %v2995_v58, %v3027_v57  ;;  %v3051_v36 = vsel %vm59_vm0, %v3041_v30, 0.0 }
 0x9a0   :  { %v5432_v21 = vsub.f32 %v2994_v4, %v3026_v41  ;;  %3052 = vadd.xlane.f32.xlu1 %v3051_v36  ;;  %v3048_v17 = vsel %vm59_vm0, %v3040_v45, 0.0 }
 0x9a1   :  { %3049 = vadd.xlane.f32.xlu0 %v3048_v17  ;;  %v3043_v55 = vmul.f32 %v5429_v63, %v5429_v63 }
 0x9a2   :  { %v3017_v47 = vpop.xlane.xlu1 %3016  ;;  %v3042_v48 = vmul.f32 %v5432_v21, %v5432_v21 }
 0x9a3   :  { %v3029_v25 = vmul.f32 0.03125, %v3017_v47  ;;  %v3014_v51 = vpop.xlane.xlu0 %3013  ;;  %v3057_v35 = vsel %vm59_vm0, %v3043_v55, 0.0 }
 0x9a4   :  { %v3028_v31 = vmul.f32 0.03125, %v3014_v51  ;;  %3058 = vadd.xlane.f32.xlu1 %v3057_v35  ;;  %v3054_v60 = vsel %vm59_vm0, %v3042_v48, 0.0 }
 0x9a5   :  { %v5441_v2 = vsub.f32 %v2997_v22, %v3029_v25  ;;  %3055 = vadd.xlane.f32.xlu0 %v3054_v60 }
 0x9a6   :  { %v5443_v6 = vsub.f32 %v2996_v19, %v3028_v31  ;;  %v3023_v50 = vpop.xlane.xlu1 %3022 }
 0x9a7   :  { %v3031_v12 = vmul.f32 0.03125, %v3023_v50  ;;  %v3020_v24 = vpop.xlane.xlu0 %3019  ;;  %v3045_v37 = vmul.f32 %v5441_v2, %v5441_v2 }
 0x9a8   :  { %v3030_v42 = vmul.f32 0.03125, %v3020_v24  ;;  %v3044_v40 = vmul.f32 %v5443_v6, %v5443_v6 }
 0x9a9   :  { %v5449_v26 = vsub.f32 %v2999_v20, %v3031_v12  ;;  %v3063_v61 = vsel %vm59_vm0, %v3045_v37, 0.0  ;;  %v3349_v20 = vld [vmem:[%s5519_s12] ss:$0 sm:$0xff] }
 0x9aa   :  { %v5452_v49 = vsub.f32 %v2998_v13, %v3030_v42  ;;  %3064 = vadd.xlane.f32.xlu1 %v3063_v61  ;;  %v3060_v52 = vsel %vm59_vm0, %v3044_v40, 0.0 }
 0x9ab   :  { %3061 = vadd.xlane.f32.xlu0 %v3060_v52  ;;  %v3047_v29 = vmul.f32 %v5449_v26, %v5449_v26 }
 0x9ac   :  { %v3046_v53 = vmul.f32 %v5452_v49, %v5452_v49 }
 0x9ad   :  { %v3069_v56 = vsel %vm59_vm0, %v3047_v29, 0.0 }
 0x9ae   :  { %3070 = vadd.xlane.f32.xlu1 %v3069_v56  ;;  %v3066_v9 = vsel %vm59_vm0, %v3046_v53, 0.0 }
 0x9af   :  { %3067 = vadd.xlane.f32.xlu0 %v3066_v9 }
 0xa2d   :  { %v3053_v46 = vpop.xlane.xlu1 %3052 }
 0xa2e   :  { %v3073_v59 = vmul.f32 0.03125, %v3053_v46  ;;  %v3050_v0 = vpop.xlane.xlu0 %3049 }
 0xa2f   :  { %v3072_v14 = vmul.f32 0.03125, %v3050_v0 }
 0xa30   :  { %v3081_v58 = vadd.f32 1e-05, %v3073_v59 }
 0xa31   :  { %v3080_v4 = vadd.f32 1e-05, %v3072_v14  ;;  %v3059_v7 = vpop.xlane.xlu1 %3058 }
 0xa32   :  { %4137 = vrsqrt.f32 %v3081_v58  ;;  %v3075_v44 = vmul.f32 0.03125, %v3059_v7  ;;  %v3056_v10 = vpop.xlane.xlu0 %3055 }
 0xa33   :  { %4139 = vrsqrt.f32 %v3080_v4  ;;  %v3074_v43 = vmul.f32 0.03125, %v3056_v10 }
 0xa34   :  { %v3083_v5 = vadd.f32 1e-05, %v3075_v44 }
 0xa35   :  { %v3082_v27 = vadd.f32 1e-05, %v3074_v43 }
 0xa36   :  { %4141 = vrsqrt.f32 %v3083_v5 }
 0xa37   :  { %4143 = vrsqrt.f32 %v3082_v27  ;;  %v3065_v22 = vpop.xlane.xlu1 %3064 }
 0xa38   :  { %v3077_v3 = vmul.f32 0.03125, %v3065_v22  ;;  %v3062_v19 = vpop.xlane.xlu0 %3061 }
 0xa39   :  { %v3076_v33 = vmul.f32 0.03125, %v3062_v19 }
 0xa3a   :  { %v3085_v11 = vadd.f32 1e-05, %v3077_v3 }
 0xa3b   :  { %v3084_v1 = vadd.f32 1e-05, %v3076_v33  ;;  %v3071_v28 = vpop.xlane.xlu1 %3070 }
 0xa3c   :  { %v4138_v39 = vpop.eup %4137  ;;  %4145 = vrsqrt.f32 %v3085_v11  ;;  %v3079_v13 = vmul.f32 0.03125, %v3071_v28  ;;  %v3068_v38 = vpop.xlane.xlu0 %3067 }
 0xa3d   :  { %v4140_v16 = vpop.eup %4139  ;;  %v3097_v32 = vmul.f32 %v4138_v39, %v5421_v18  ;;  %4147 = vrsqrt.f32 %v3084_v1  ;;  %v3078_v15 = vmul.f32 0.03125, %v3068_v38 }
 0xa3e   :  { %v3096_v23 = vmul.f32 %v4140_v16, %v5423_v62  ;;  %v3087_v8 = vadd.f32 1e-05, %v3079_v13 }
 0xa3f   :  { %v3112_v57 = vmul.f32 %v3349_v20, %v3097_v32  ;;  %v3086_v54 = vadd.f32 1e-05, %v3078_v15 }
 0xa40   :  { %v4142_v30 = vpop.eup %4141  ;;  %v3111_v41 = vmul.f32 %v3349_v20, %v3096_v23  ;;  %4149 = vrsqrt.f32 %v3087_v8 }
 0xa41   :  { %v4144_v45 = vpop.eup %4143  ;;  %v3127_v36 = vadd.f32 %v3350_v34, %v3112_v57  ;;  %v3099_v17 = vmul.f32 %v4142_v30, %v5429_v63  ;;  %4151 = vrsqrt.f32 %v3086_v54 }
 0xa42   :  { %v3126_v18 = vadd.f32 %v3350_v34, %v3111_v41  ;;  %v3098_v55 = vmul.f32 %v4144_v45, %v5432_v21 }
 0xa43   :  { %3135 = vst.msk [vmem:[%s5521_s14 + $0x8] sm:$0xff] %vm59_vm0, %v3127_v36  ;;  %v3114_v62 = vmul.f32 %v3349_v20, %v3099_v17 }
 0xa44   :  { %3134 = vst.msk [vmem:[%s5521_s14] sm:$0xff] %vm59_vm0, %v3126_v18  ;;  %v3113_v47 = vmul.f32 %v3349_v20, %v3098_v55 }
 0xa45   :  { %v3129_v48 = vadd.f32 %v3350_v34, %v3114_v62 }
 0xa46   :  { %v4146_v25 = vpop.eup %4145  ;;  %v3128_v51 = vadd.f32 %v3350_v34, %v3113_v47 }
 0xa47   :  { %v4148_v63 = vpop.eup %4147  ;;  %3137 = vst.msk [vmem:[%s5521_s14 + $0x18] sm:$0xff] %vm59_vm0, %v3129_v48  ;;  %v3101_v21 = vmul.f32 %v4146_v25, %v5441_v2 }
 0xa48   :  { %3136 = vst.msk [vmem:[%s5521_s14 + $0x10] sm:$0xff] %vm59_vm0, %v3128_v51  ;;  %v3100_v35 = vmul.f32 %v4148_v63, %v5443_v6 }
 0xa49   :  { %v3116_v31 = vmul.f32 %v3349_v20, %v3101_v21 }
 0xa4a   :  { %v4150_v60 = vpop.eup %4149  ;;  %v3115_v50 = vmul.f32 %v3349_v20, %v3100_v35 }
 0xa4b   :  { %v4152_v12 = vpop.eup %4151  ;;  %v3131_v24 = vadd.f32 %v3350_v34, %v3116_v31  ;;  %v3103_v37 = vmul.f32 %v4150_v60, %v5449_v26 }
 0xa4c   :  { %v3130_v42 = vadd.f32 %v3350_v34, %v3115_v50  ;;  %v3102_v40 = vmul.f32 %v4152_v12, %v5452_v49 }
 0xa4d   :  { %3139 = vst.msk [vmem:[%s5521_s14 + $0x28] sm:$0xff] %vm59_vm0, %v3131_v24  ;;  %v3118_v2 = vmul.f32 %v3349_v20, %v3103_v37 }
 0xa4e   :  { %3138 = vst.msk [vmem:[%s5521_s14 + $0x20] sm:$0xff] %vm59_vm0, %v3130_v42  ;;  %v3117_v6 = vmul.f32 %v3349_v20, %v3102_v40 }
 0xa4f   :  { %v3133_v61 = vadd.f32 %v3350_v34, %v3118_v2 }
 0xa50   :  { %v3132_v52 = vadd.f32 %v3350_v34, %v3117_v6 }
 0xa51   :  { %3141 = vst.msk [vmem:[%s5521_s14 + $0x38] sm:$0xff] %vm59_vm0, %v3133_v61 }
 0xa52   :  { %3140 = vst.msk [vmem:[%s5521_s14 + $0x30] sm:$0xff] %vm59_vm0, %v3132_v52 }

</bundles_post_ra>
